<compile_context>
chip_gen: v7x
topology: tpu7x:2x2x1
jax: 0.10.0
libtpu: 0.0.40
codegen_flags: <defaults>
</compile_context>

<pallas_src>
import functools

import jax
import jax.numpy as jnp
from jax.experimental import pallas as pl
from jax.experimental.pallas import tpu as pltpu


TILE = 512                                  # sweep 512 / 1024; 512 keeps VMEM modest on v7x
_RESIDENT_XWG_LIMIT = 8 * 1024 * 1024       # bytes (x2 for double buffering) of resident XWg


# ---------------------------------------------------------------------------
# Kernel 1: tiled  conv = relu(A_hat @ XWg + bg) ; per-row-tile node-sum
# ---------------------------------------------------------------------------
def _gcn_partial_kernel(a_ref, xwg_ref, bg_ref, psum_ref, conv_acc,
                        *, tm, tk, n_real, resident_xwg):
    i = pl.program_id(0)                 # row-tile index   ("parallel")
    k = pl.program_id(1)                 # reduction index  ("arbitrary", last)

    @pl.when(k == 0)
    def _():
        conv_acc[...] = jnp.zeros_like(conv_acc)

    if resident_xwg:
        # XWg lives whole in VMEM (DMA'd once): slice this k-chunk, aligned start.
        start = pl.multiple_of(k * tk, tk)
        xwg_blk = xwg_ref[pl.ds(start, tk), :]
    else:
        xwg_blk = xwg_ref[...]

    # bf16 x bf16 -> f32 accumulation on the MXU.
    conv_acc[...] += jnp.dot(a_ref[...], xwg_blk,
                             preferred_element_type=jnp.float32)

    @pl.when(k == pl.num_programs(1) - 1)
    def _():
        conv = conv_acc[...] + bg_ref[...]
        out = jnp.maximum(conv, 0.0)                              # relu
        # Mask rows that only exist because of padding (the bias made them nonzero).
        row = jax.lax.broadcasted_iota(jnp.int32, conv.shape, 0) + i * tm
        out = jnp.where(row < n_real, out, 0.0)
        s = jnp.sum(out, axis=0, keepdims=True)                   # (1, C_pad) partial node-sum
        # Store as an (8, C_pad) sublane-aligned block (row 0 holds the sum, rows 1..7 zero).
        row8 = jax.lax.broadcasted_iota(jnp.int32, psum_ref.shape, 0)
        psum_ref[...] = jnp.where(row8 == 0, s, 0.0)


# ---------------------------------------------------------------------------
# Kernel 2: tiny head — combine partial sums + hoisted residual + 3-layer MLP
# ---------------------------------------------------------------------------
def _mlp_head_kernel(psum_ref, xsum_ref, w1_ref, b1_ref, w2_ref, b2_ref,
                     w3_ref, b3_ref, o_ref):
    s = jnp.sum(psum_ref[...], axis=0, keepdims=True) + xsum_ref[...]   # (1, C_pad)
    h1 = jnp.maximum(
        jnp.dot(s, w1_ref[...], preferred_element_type=jnp.float32) + b1_ref[...], 0.0)
    h2 = jnp.maximum(
        jnp.dot(h1, w2_ref[...], preferred_element_type=jnp.float32) + b2_ref[...], 0.0)
    o_ref[...] = jnp.dot(h2, w3_ref[...],
                         preferred_element_type=jnp.float32) + b3_ref[...]


# ---------------------------------------------------------------------------
# Plain-JAX prologue helpers
# ---------------------------------------------------------------------------
def normalized_adjacency_bf16(edge_index, num_nodes, n_pad):
    """D^{-1/2}(A+I)D^{-1/2} built directly at padded size in bf16.

    A[target, source] = 1 (PyG convention); diagonal forced to 1 (matches
    gcn_norm's add_remaining_self_loops for unweighted simple graphs).
    Edge weights are computed in f32 and rounded to bf16 exactly once.
    Padded rows / cols stay exactly zero (deg = 0 -> dinv = 0).
    """
    src, dst = edge_index[0], edge_index[1]
    idx = jnp.arange(num_nodes)
    a = (jnp.zeros((n_pad, n_pad), jnp.bfloat16)
         .at[dst, src].set(1.0)
         .at[idx, idx].set(1.0))
    deg = jnp.sum(a, axis=1, dtype=jnp.float32)            # exact small integers
    dinv = jnp.where(deg > 0, jax.lax.rsqrt(deg), 0.0)     # f32
    a = a.at[dst, src].set((dinv[dst] * dinv[src]).astype(jnp.bfloat16))
    a = a.at[idx, idx].set((dinv[idx] * dinv[idx]).astype(jnp.bfloat16))
    return a


def _round_up(v, m):
    return (v + m - 1) // m * m


def _pad2(a, rows, cols):
    out = jnp.zeros((rows, cols), jnp.float32)
    return out.at[:a.shape[0], :a.shape[1]].set(a.astype(jnp.float32))


# ---------------------------------------------------------------------------
# Wrapper
# ---------------------------------------------------------------------------
@jax.jit
def gnn_value(x, edge_index, params):
    n, c = x.shape
    hidden = params["w1"].shape[1]

    tm = tk = TILE
    nr = -(-n // tm)
    if nr > 1 and nr % 2:            # even row-tile count -> balanced megacore split (v7x)
        nr += 1
    n_pad = nr * tm
    nk = n_pad // tk

    c_pad = _round_up(c, 128)
    h_pad = _round_up(hidden, 128)
    o_pad = 128

    # --- prologue (plain XLA, cheap relative to the A stream) -------------
    a_pad = normalized_adjacency_bf16(edge_index, n, n_pad)            # bf16, padded
    x_f32 = x.astype(jnp.float32)
    xwg = _pad2(x_f32 @ params["wg"].astype(jnp.float32),
                n_pad, c_pad).astype(jnp.bfloat16)                      # X @ Wg, computed once
    bg_pad = _pad2(params["bg"], 1, c_pad)
    xsum = _pad2(jnp.sum(x_f32, axis=0, keepdims=True), 1, c_pad)       # hoisted residual colsum(X)
    w1_pad = _pad2(params["w1"], c_pad, h_pad)
    b1_pad = _pad2(params["b1"], 1, h_pad)
    w2_pad = _pad2(params["w2"], h_pad, h_pad)
    b2_pad = _pad2(params["b2"], 1, h_pad)
    w3_pad = _pad2(params["w3"], h_pad, o_pad)
    b3_pad = _pad2(params["b3"], 1, o_pad)

    # Keep XWg fully VMEM-resident unless it is too big (v7x has only 64 MiB);
    # budget x2 for double buffering of the constant block.
    resident_xwg = 2 * (n_pad * c_pad * 2) <= _RESIDENT_XWG_LIMIT
    if resident_xwg:
        xwg_spec = pl.BlockSpec((n_pad, c_pad), lambda i, k: (0, 0))    # DMA'd once
    else:
        xwg_spec = pl.BlockSpec((tk, c_pad), lambda i, k: (k, 0))       # streamed per k

    kernel1 = functools.partial(_gcn_partial_kernel, tm=tm, tk=tk,
                                n_real=n, resident_xwg=resident_xwg)

    xwg_bytes = (n_pad * c_pad * 2) if resident_xwg else (nr * n_pad * c_pad * 2)
    bytes_accessed = (n_pad * n_pad * 2          # A_hat (bf16), dominant stream
                      + xwg_bytes                # XWg
                      + c_pad * 4                # bias
                      + nr * 8 * c_pad * 4)      # partial-sum output

    psum = pl.pallas_call(
        kernel1,
        out_shape=jax.ShapeDtypeStruct((nr * 8, c_pad), jnp.float32),
        grid_spec=pltpu.PrefetchScalarGridSpec(
            num_scalar_prefetch=0,
            grid=(nr, nk),                                   # reduction axis last
            in_specs=[
                pl.BlockSpec((tm, tk), lambda i, k: (i, k)),    # A_hat tile (streamed)
                xwg_spec,                                       # XWg (resident or per-k)
                pl.BlockSpec((1, c_pad), lambda i, k: (0, 0)),  # bias (resident)
            ],
            out_specs=pl.BlockSpec((8, c_pad), lambda i, k: (i, 0)),
            scratch_shapes=[pltpu.VMEM((tm, c_pad), jnp.float32)],
        ),
        compiler_params=pltpu.CompilerParams(
            dimension_semantics=("parallel", "arbitrary"),
            vmem_limit_bytes=48 * 1024 * 1024),
        cost_estimate=pl.CostEstimate(
            flops=2 * n_pad * n_pad * c_pad,
            transcendentals=0,
            bytes_accessed=bytes_accessed),
    )(a_pad, xwg, bg_pad)

    y = pl.pallas_call(
        _mlp_head_kernel,
        out_shape=jax.ShapeDtypeStruct((1, o_pad), jnp.float32),
    )(psum, xsum, w1_pad, b1_pad, w2_pad, b2_pad, w3_pad, b3_pad)

    return y[0, :1]   # matches PyTorch output shape (1,)


# ---------------------------------------------------------------------------
# Params / references / self-test
# ---------------------------------------------------------------------------
def init_params(key, in_channels, hidden_dim=32):
    ks = jax.random.split(key, 8)
    sc = 0.1
    return {
        "wg": sc * jax.random.normal(ks[0], (in_channels, in_channels), jnp.float32),
        "bg": sc * jax.random.normal(ks[1], (1, in_channels), jnp.float32),
        "w1": sc * jax.random.normal(ks[2], (in_channels, hidden_dim), jnp.float32),
        "b1": sc * jax.random.normal(ks[3], (1, hidden_dim), jnp.float32),
        "w2": sc * jax.random.normal(ks[4], (hidden_dim, hidden_dim), jnp.float32),
        "b2": sc * jax.random.normal(ks[5], (1, hidden_dim), jnp.float32),
        "w3": sc * jax.random.normal(ks[6], (hidden_dim, 1), jnp.float32),
        "b3": sc * jax.random.normal(ks[7], (1, 1), jnp.float32),
    }


def reference_f32(x, edge_index, params):
    n = x.shape[0]
    src, dst = edge_index[0], edge_index[1]
    idx = jnp.arange(n)
    adj = (jnp.zeros((n, n), jnp.float32).at[dst, src].set(1.0)
           .at[idx, idx].set(1.0))
    deg = jnp.sum(adj, axis=1)
    dinv = jnp.where(deg > 0, 1.0 / jnp.sqrt(deg), 0.0)
    a_hat = dinv[:, None] * adj * dinv[None, :]
    out = jax.nn.relu(a_hat @ x @ params["wg"] + params["bg"])
    h = jnp.sum(out + x, axis=0, keepdims=True)
    h = jax.nn.relu(h @ params["w1"] + params["b1"])
    h = jax.nn.relu(h @ params["w2"] + params["b2"])
    return (h @ params["w3"] + params["b3"]).reshape((1,))


def reference_bf16_matched(x, edge_index, params):
    """Same math with the kernel's bf16 quantization of A_hat and XWg."""
    n = x.shape[0]
    n_pad = _round_up(n, TILE)
    a_bf = normalized_adjacency_bf16(edge_index, n, n_pad)[:n, :n].astype(jnp.float32)
    xwg_bf = (x @ params["wg"]).astype(jnp.bfloat16).astype(jnp.float32)
    out = jax.nn.relu(a_bf @ xwg_bf + params["bg"])
    h = jnp.sum(out + x, axis=0, keepdims=True)
    h = jax.nn.relu(h @ params["w1"] + params["b1"])
    h = jax.nn.relu(h @ params["w2"] + params["b2"])
    return (h @ params["w3"] + params["b3"]).reshape((1,))


if __name__ == "__main__":
    key = jax.random.PRNGKey(0)
    k_x, k_p = jax.random.split(key)

    num_nodes, in_channels, hidden_dim = 8, 4, 32
    x = jax.random.normal(k_x, (num_nodes, in_channels), jnp.float32)
    # simple undirected ring graph (both directions listed, PyG-style)
    src = jnp.arange(num_nodes)
    dst = (src + 1) % num_nodes
    edge_index = jnp.stack([jnp.concatenate([src, dst]),
                            jnp.concatenate([dst, src])], axis=0)

    params = init_params(k_p, in_channels, hidden_dim)

    y = jax.block_until_ready(gnn_value(x, edge_index, params))

    y_bf = reference_bf16_matched(x, edge_index, params)   # structural check (tight)
    y_32 = reference_f32(x, edge_index, params)             # semantic check (bf16-loose)
    assert jnp.allclose(y, y_bf, atol=1e-3, rtol=1e-3), (y, y_bf)
    assert jnp.allclose(y, y_32, atol=5e-2, rtol=5e-2), (y, y_32)

    print("KERNEL_OK")
</pallas_src>

<mosaic_0001>
module attributes {stable_mosaic.version = 11 : i64} {
  func.func @_gcn_partial_kernel(%arg0: i32, %arg1: i32, %arg2: memref<512x512xbf16, #tpu.memory_space<vmem>>, %arg3: memref<512x128xbf16, #tpu.memory_space<vmem>>, %arg4: memref<1x128xf32, #tpu.memory_space<vmem>>, %arg5: memref<8x128xf32, #tpu.memory_space<vmem>>, %arg6: memref<512x128xf32, #tpu.memory_space<vmem>>) attributes {dimension_semantics = [#tpu.dimension_semantics<parallel>, #tpu.dimension_semantics<arbitrary>], iteration_bounds = array<i64: 1, 1>, scalar_prefetch = 0 : i64, scratch_operands = 1 : i64, tpu.core_type = #tpu.core_type<tc>, window_params = [{transform_indices = @transform_0, window_bounds = array<i64: 512, 512>}, {pipeline_mode = #tpu.pipeline_mode<synchronous>, transform_indices = @transform_1, window_bounds = array<i64: 512, 128>}, {pipeline_mode = #tpu.pipeline_mode<synchronous>, transform_indices = @transform_2, window_bounds = array<i64: 1, 128>}, {transform_indices = @transform_3, window_bounds = array<i64: 8, 128>}]} {
    %c0_i32 = arith.constant 0 : i32
    %0 = arith.cmpi eq, %arg1, %c0_i32 : i32
    %1 = arith.extui %0 : i1 to i32
    %c0_i32_0 = arith.constant 0 : i32
    %2 = arith.cmpi ne, %1, %c0_i32_0 : i32
    scf.if %2 {
      %cst_9 = arith.constant 0.000000e+00 : f32
      %15 = vector.broadcast %cst_9 : f32 to vector<512x128xf32>
      %c0_10 = arith.constant 0 : index
      %c0_11 = arith.constant 0 : index
      %16 = vector.load %arg6[%c0_10, %c0_11] : memref<512x128xf32, #tpu.memory_space<vmem>>, vector<512x128xf32>
      tpu.vector_store %arg6[%c0_10, %c0_11], %15 {strides = array<i32>} : memref<512x128xf32, #tpu.memory_space<vmem>>, vector<512x128xf32>,
    } else {
    }
    %c512_i32 = arith.constant 512 : i32
    %3 = arith.muli %arg1, %c512_i32 : i32
    %4 = tpu.assume_multiple %3, 512 : i32
    %5 = arith.index_cast %4 : i32 to index
    %c0 = arith.constant 0 : index
    %6 = vector.load %arg3[%5, %c0] : memref<512x128xbf16, #tpu.memory_space<vmem>>, vector<512x128xbf16>
    %c0_1 = arith.constant 0 : index
    %c0_2 = arith.constant 0 : index
    %7 = vector.load %arg6[%c0_1, %c0_2] : memref<512x128xf32, #tpu.memory_space<vmem>>, vector<512x128xf32>
    %c0_3 = arith.constant 0 : index
    %c0_4 = arith.constant 0 : index
    %8 = vector.load %arg2[%c0_3, %c0_4] : memref<512x512xbf16, #tpu.memory_space<vmem>>, vector<512x512xbf16>
    %cst = arith.constant dense<0.000000e+00> : vector<512x128xf32>
    %9 = tpu.matmul %8, %6, %cst {dimension_numbers = #tpu.dot_dimension_numbers<[1], [0], [0], [1], [0, 0, 1, 1], [], []>} : vector<512x512xbf16>, vector<512x128xbf16>, vector<512x128xf32> -> vector<512x128xf32>
    %10 = arith.addf %7, %9 : vector<512x128xf32>
    %c0_5 = arith.constant 0 : index
    %c0_6 = arith.constant 0 : index
    %11 = vector.load %arg6[%c0_5, %c0_6] : memref<512x128xf32, #tpu.memory_space<vmem>>, vector<512x128xf32>
    tpu.vector_store %arg6[%c0_5, %c0_6], %10 {strides = array<i32>} : memref<512x128xf32, #tpu.memory_space<vmem>>, vector<512x128xf32>,
    %c0_i32_7 = arith.constant 0 : i32
    %12 = arith.cmpi eq, %arg1, %c0_i32_7 : i32
    %13 = arith.extui %12 : i1 to i32
    %c0_i32_8 = arith.constant 0 : i32
    %14 = arith.cmpi ne, %13, %c0_i32_8 : i32
    scf.if %14 {
      %c0_9 = arith.constant 0 : index
      %c0_10 = arith.constant 0 : index
      %15 = vector.load %arg6[%c0_9, %c0_10] : memref<512x128xf32, #tpu.memory_space<vmem>>, vector<512x128xf32>
      %c0_11 = arith.constant 0 : index
      %c0_12 = arith.constant 0 : index
      %16 = vector.load %arg4[%c0_11, %c0_12] : memref<1x128xf32, #tpu.memory_space<vmem>>, vector<1x128xf32>
      %17 = vector.broadcast %16 : vector<1x128xf32> to vector<512x128xf32>
      %18 = arith.addf %15, %17 : vector<512x128xf32>
      %cst_13 = arith.constant 0.000000e+00 : f32
      %19 = vector.broadcast %cst_13 : f32 to vector<512x128xf32>
      %20 = arith.maximumf %18, %19 : vector<512x128xf32>
      %21 = tpu.iota {dimensions = array<i32: 0>} : vector<512x128xi32>
      %c512_i32_14 = arith.constant 512 : i32
      %22 = arith.muli %arg0, %c512_i32_14 : i32
      %23 = vector.broadcast %22 : i32 to vector<512x128xi32>
      %24 = arith.addi %21, %23 : vector<512x128xi32>
      %c8_i32 = arith.constant 8 : i32
      %25 = vector.broadcast %c8_i32 : i32 to vector<512x128xi32>
      %26 = arith.cmpi slt, %24, %25 : vector<512x128xi32>
      %cst_15 = arith.constant 0.000000e+00 : f32
      %27 = vector.broadcast %cst_15 : f32 to vector<512x128xf32>
      %28 = arith.select %26, %20, %27 : vector<512x128xi1>, vector<512x128xf32>
      %cst_16 = arith.constant dense<0.000000e+00> : vector<128xf32>
      %29 = vector.multi_reduction <add>, %28, %cst_16 [0] : vector<512x128xf32> to vector<128xf32>
      %30 = vector.shape_cast %29 : vector<128xf32> to vector<1x128xf32>
      %31 = tpu.iota {dimensions = array<i32: 0>} : vector<8x128xi32>
      %c0_i32_17 = arith.constant 0 : i32
      %32 = vector.broadcast %c0_i32_17 : i32 to vector<8x128xi32>
      %33 = arith.cmpi eq, %31, %32 : vector<8x128xi32>
      %cst_18 = arith.constant 0.000000e+00 : f32
      %34 = vector.shape_cast %30 : vector<1x128xf32> to vector<1x128xf32>
      %35 = vector.broadcast %34 : vector<1x128xf32> to vector<8x128xf32>
      %36 = vector.broadcast %cst_18 : f32 to vector<8x128xf32>
      %37 = arith.select %33, %35, %36 : vector<8x128xi1>, vector<8x128xf32>
      %c0_19 = arith.constant 0 : index
      %c0_20 = arith.constant 0 : index
      %38 = vector.load %arg5[%c0_19, %c0_20] : memref<8x128xf32, #tpu.memory_space<vmem>>, vector<8x128xf32>
      tpu.vector_store %arg5[%c0_19, %c0_20], %37 {strides = array<i32>} : memref<8x128xf32, #tpu.memory_space<vmem>>, vector<8x128xf32>,
    } else {
    }
    return
  }
  func.func @transform_0(%arg0: i32, %arg1: i32) -> (i32, i32) {
    %c0_i32 = arith.constant 0 : i32
    return %arg0, %arg1 : i32, i32
  }
  func.func @transform_1(%arg0: i32, %arg1: i32) -> (i32, i32) {
    %c0_i32 = arith.constant 0 : i32
    %c0_i32_0 = arith.constant 0 : i32
    %c0_i32_1 = arith.constant 0 : i32
    return %c0_i32, %c0_i32_0 : i32, i32
  }
  func.func @transform_2(%arg0: i32, %arg1: i32) -> (i32, i32) {
    %c0_i32 = arith.constant 0 : i32
    %c0_i32_0 = arith.constant 0 : i32
    %c0_i32_1 = arith.constant 0 : i32
    return %c0_i32, %c0_i32_0 : i32, i32
  }
  func.func @transform_3(%arg0: i32, %arg1: i32) -> (i32, i32) {
    %c0_i32 = arith.constant 0 : i32
    %c0_i32_0 = arith.constant 0 : i32
    return %arg0, %c0_i32 : i32, i32
  }
}

module attributes {stable_mosaic.version = 11 : i64} {
  func.func @_mlp_head_kernel(%arg0: memref<8x128xf32, #tpu.memory_space<vmem>>, %arg1: memref<1x128xf32, #tpu.memory_space<vmem>>, %arg2: memref<128x128xf32, #tpu.memory_space<vmem>>, %arg3: memref<1x128xf32, #tpu.memory_space<vmem>>, %arg4: memref<128x128xf32, #tpu.memory_space<vmem>>, %arg5: memref<1x128xf32, #tpu.memory_space<vmem>>, %arg6: memref<128x128xf32, #tpu.memory_space<vmem>>, %arg7: memref<1x128xf32, #tpu.memory_space<vmem>>, %arg8: memref<1x128xf32, #tpu.memory_space<vmem>>) attributes {dimension_semantics = [], scalar_prefetch = 0 : i64, scratch_operands = 0 : i64, tpu.core_type = #tpu.core_type<tc>} {
    %c0 = arith.constant 0 : index
    %c0_0 = arith.constant 0 : index
    %0 = vector.load %arg0[%c0, %c0_0] : memref<8x128xf32, #tpu.memory_space<vmem>>, vector<8x128xf32>
    %cst = arith.constant dense<0.000000e+00> : vector<128xf32>
    %1 = vector.multi_reduction <add>, %0, %cst [0] : vector<8x128xf32> to vector<128xf32>
    %2 = vector.shape_cast %1 : vector<128xf32> to vector<1x128xf32>
    %c0_1 = arith.constant 0 : index
    %c0_2 = arith.constant 0 : index
    %3 = vector.load %arg1[%c0_1, %c0_2] : memref<1x128xf32, #tpu.memory_space<vmem>>, vector<1x128xf32>
    %4 = arith.addf %2, %3 : vector<1x128xf32>
    %c0_3 = arith.constant 0 : index
    %c0_4 = arith.constant 0 : index
    %5 = vector.load %arg2[%c0_3, %c0_4] : memref<128x128xf32, #tpu.memory_space<vmem>>, vector<128x128xf32>
    %cst_5 = arith.constant dense<0.000000e+00> : vector<1x128xf32>
    %6 = tpu.matmul %4, %5, %cst_5 {dimension_numbers = #tpu.dot_dimension_numbers<[1], [0], [0], [1], [0, 0, 1, 1], [], []>} : vector<1x128xf32>, vector<128x128xf32>, vector<1x128xf32> -> vector<1x128xf32>
    %c0_6 = arith.constant 0 : index
    %c0_7 = arith.constant 0 : index
    %7 = vector.load %arg3[%c0_6, %c0_7] : memref<1x128xf32, #tpu.memory_space<vmem>>, vector<1x128xf32>
    %8 = arith.addf %6, %7 : vector<1x128xf32>
    %cst_8 = arith.constant 0.000000e+00 : f32
    %9 = vector.broadcast %cst_8 : f32 to vector<1x128xf32>
    %10 = arith.maximumf %8, %9 : vector<1x128xf32>
    %c0_9 = arith.constant 0 : index
    %c0_10 = arith.constant 0 : index
    %11 = vector.load %arg4[%c0_9, %c0_10] : memref<128x128xf32, #tpu.memory_space<vmem>>, vector<128x128xf32>
    %cst_11 = arith.constant dense<0.000000e+00> : vector<1x128xf32>
    %12 = tpu.matmul %10, %11, %cst_11 {dimension_numbers = #tpu.dot_dimension_numbers<[1], [0], [0], [1], [0, 0, 1, 1], [], []>} : vector<1x128xf32>, vector<128x128xf32>, vector<1x128xf32> -> vector<1x128xf32>
    %c0_12 = arith.constant 0 : index
    %c0_13 = arith.constant 0 : index
    %13 = vector.load %arg5[%c0_12, %c0_13] : memref<1x128xf32, #tpu.memory_space<vmem>>, vector<1x128xf32>
    %14 = arith.addf %12, %13 : vector<1x128xf32>
    %cst_14 = arith.constant 0.000000e+00 : f32
    %15 = vector.broadcast %cst_14 : f32 to vector<1x128xf32>
    %16 = arith.maximumf %14, %15 : vector<1x128xf32>
    %c0_15 = arith.constant 0 : index
    %c0_16 = arith.constant 0 : index
    %17 = vector.load %arg6[%c0_15, %c0_16] : memref<128x128xf32, #tpu.memory_space<vmem>>, vector<128x128xf32>
    %cst_17 = arith.constant dense<0.000000e+00> : vector<1x128xf32>
    %18 = tpu.matmul %16, %17, %cst_17 {dimension_numbers = #tpu.dot_dimension_numbers<[1], [0], [0], [1], [0, 0, 1, 1], [], []>} : vector<1x128xf32>, vector<128x128xf32>, vector<1x128xf32> -> vector<1x128xf32>
    %c0_18 = arith.constant 0 : index
    %c0_19 = arith.constant 0 : index
    %19 = vector.load %arg7[%c0_18, %c0_19] : memref<1x128xf32, #tpu.memory_space<vmem>>, vector<1x128xf32>
    %20 = arith.addf %18, %19 : vector<1x128xf32>
    %c0_20 = arith.constant 0 : index
    %c0_21 = arith.constant 0 : index
    %21 = vector.load %arg8[%c0_20, %c0_21] : memref<1x128xf32, #tpu.memory_space<vmem>>, vector<1x128xf32>
    tpu.vector_store %arg8[%c0_20, %c0_21], %20 {strides = array<i32>} : memref<1x128xf32, #tpu.memory_space<vmem>>, vector<1x128xf32>,
    return
  }
}

</mosaic_0001>

<bundles_post_ra>
// kernel: gnn_value.3
= control target key start
LH: loop header
LB: loop body
LE: loop exit
PB: predicated region body
PF: predicated region fallthrough
CT: control target
= control target key end

     0   :  { %v573_v3 = vmov 0.0|0.0   ;;  %vm574_vm0 = vmmov 0   ;;  %v575_v6 = vmov 0.0   ;;  %s823_s0 = inlined_call_operand.vmem [shape: f32[8,128], index: 0, kind: input, shape index: {}]   ;;  %s824_s1 = inlined_call_operand.vmem [shape: f32[1,128], index: 1, kind: input, shape index: {}]   ;;  %s825_s2 = inlined_call_operand.vmem [shape: f32[128,128], index: 2, kind: input, shape index: {}]   ;;  %s826_s3 = inlined_call_operand.vmem [shape: f32[1,128], index: 3, kind: input, shape index: {}]   ;;  %s827_s4 = inlined_call_operand.vmem [shape: f32[128,128], index: 4, kind: input, shape index: {}]   ;;  %s828_s5 = inlined_call_operand.vmem [shape: f32[1,128], index: 5, kind: input, shape index: {}]   ;;  %s829_s6 = inlined_call_operand.vmem [shape: f32[128,128], index: 6, kind: input, shape index: {}]   ;;  %s830_s7 = inlined_call_operand.vmem [shape: f32[1,128], index: 7, kind: input, shape index: {}]   ;;  %s831_s8 = inlined_call_operand.hbm [shape: f32[1,128], index: 8, kind: output, shape index: {}]  }
   0x1   :  { %v39_v0 = vld [vmem:[%s825_s2] sm:$0xff]  ;;  %v40_v1 = vld [vmem:[%s825_s2 + $0x8] sm:$0xff]  ;;  %v41_v2 = vld [vmem:[%s825_s2 + $0x10] sm:$0xff]  ;;  %473 = vmatprep.subr.bf16.mxu0 %v573_v3  ;;  %400 = vmatprep.mubr.msk.f32.mxu0 %vm574_vm0, %v575_v6 }
   0x2   :  { %v474_v4 = vpack.c.bf16 %v40_v1, %v39_v0  ;;  %v42_v5 = vld [vmem:[%s825_s2 + $0x18] sm:$0xff]  ;;  %497 = vmatprep.subr.bf16.mxu1 %v573_v3  ;;  %435 = vmatprep.mubr.msk.f32.mxu1 %vm574_vm0, %v575_v6  ;;  %v43_v8 = vld [vmem:[%s825_s2 + $0x20] sm:$0xff]  ;;  %v44_v9 = vld [vmem:[%s825_s2 + $0x28] sm:$0xff] }
   0x3   :  { %v477_v7 = vpack.c.bf16 %v42_v5, %v41_v2  ;;  %v30_v10 = vld [vmem:[%s823_s0] sm:$0xff]  ;;  %v128_v13 = vld [vmem:[%s827_s4 + $0x8] sm:$0xff]  ;;  %v129_v14 = vld [vmem:[%s827_s4 + $0x10] sm:$0xff]  ;;  %v480_v15 = vpack.c.bf16 %v44_v9, %v43_v8 }
   0x4   :  { %475 = vmatpush3.bf16.msra.mxu0 %v474_v4  ;;  %v31_v11 = vrot.slane %v30_v10, 4  ;;  %v127_v12 = vld [vmem:[%s827_s4] sm:$0xff]  ;;  %v130_v17 = vld [vmem:[%s827_s4 + $0x18] sm:$0xff]  ;;  %v45_v18 = vld [vmem:[%s825_s2 + $0x30] sm:$0xff] }
   0x5   :  { %476 = vmatprep.subr.bf16.mxu0 %v573_v3  ;;  %v498_v16 = vpack.c.bf16 %v128_v13, %v127_v12  ;;  %v46_v19 = vld [vmem:[%s825_s2 + $0x38] sm:$0xff]  ;;  %v501_v20 = vpack.c.bf16 %v130_v17, %v129_v14  ;;  %v131_v22 = vld [vmem:[%s827_s4 + $0x20] sm:$0xff]  ;;  %v132_v23 = vld [vmem:[%s827_s4 + $0x28] sm:$0xff] }
   0x6   :  { %v32_v21 = vadd.f32 %v31_v11, %v30_v10  ;;  %v483_v24 = vpack.c.bf16 %v46_v19, %v45_v18 }
   0x7   :  { %499 = vmatpush3.bf16.msra.mxu1 %v498_v16 }
   0x8   :  { %478 = vmatpush3.bf16.msra.mxu0 %v477_v7  ;;  %500 = vmatprep.subr.bf16.mxu1 %v573_v3 }
   0x9   :  { %479 = vmatprep.subr.bf16.mxu0 %v573_v3 }
   0xc   :  { %481 = vmatpush3.bf16.msra.mxu0 %v480_v15 }
   0xd   :  { %13 = vsyncpa [#allocation3], 0  ;;  %482 = vmatprep.subr.bf16.mxu0 %v573_v3  ;;  %v47_v25 = vld [vmem:[%s825_s2 + $0x40] sm:$0xff]  ;;  %v48_v26 = vld [vmem:[%s825_s2 + $0x48] sm:$0xff]  ;;  %502 = vmatpush3.bf16.msra.mxu1 %v501_v20  ;;  %v504_v27 = vpack.c.bf16 %v132_v23, %v131_v22  ;;  %v33_v28 = vrot.slane %v32_v21, 2  ;;  %s576_s12 = smov [#allocation2]  }
   0xe   :  { %503 = vmatprep.subr.bf16.mxu1 %v573_v3  ;;  %v133_v29 = vld [vmem:[%s827_s4 + $0x30] sm:$0xff]  ;;  %v134_v30 = vld [vmem:[%s827_s4 + $0x38] sm:$0xff]  ;;  %v486_v31 = vpack.c.bf16 %v48_v26, %v47_v25  ;;  %v135_v36 = vld [vmem:[%s827_s4 + $0x40] sm:$0xff]  ;;  %s309_s13 = sshll.u32 %s576_s12, 4  ;;  %s310_s13 = int_to_ptr.vmem [resolvable:$true] %s309_s13 }
   0xf   :  { %v49_v32 = vld [vmem:[%s825_s2 + $0x50] sm:$0xff]  ;;  %v50_v33 = vld [vmem:[%s825_s2 + $0x58] sm:$0xff]  ;;  %v507_v34 = vpack.c.bf16 %v134_v30, %v133_v29  ;;  %v34_v35 = vadd.f32 %v33_v28, %v32_v21  ;;  %v136_v37 = vld [vmem:[%s827_s4 + $0x48] sm:$0xff]  ;;  %s553_s14 = scalar_lea.vmem %s310_s13, 32  ;;  %p554_p1 = scmp.lt.s32.totalorder %s310_s13, %s310_s13 }
  0x10   :  { %484 = vmatpush3.bf16.msra.mxu0 %v483_v24  ;;  %v489_v38 = vpack.c.bf16 %v50_v33, %v49_v32  ;;  %v51_v39 = vld [vmem:[%s825_s2 + $0x60] sm:$0xff]  ;;  %v52_v40 = vld [vmem:[%s825_s2 + $0x68] sm:$0xff]  ;;  %v510_v41 = vpack.c.bf16 %v136_v37, %v135_v36  ;;  %v137_v43 = vld [vmem:[%s827_s4 + $0x50] sm:$0xff] }
  0x11   :  { %485 = vmatprep.subr.bf16.mxu0 %v573_v3  ;;  %505 = vmatpush3.bf16.msra.mxu1 %v504_v27  ;;  %v35_v42 = vrot.slane %v34_v35, 1  ;;  %v138_v44 = vld [vmem:[%s827_s4 + $0x58] sm:$0xff]  ;;  %v492_v45 = vpack.c.bf16 %v52_v40, %v51_v39  ;;  %v53_v46 = vld [vmem:[%s825_s2 + $0x70] sm:$0xff]  ;;  %v139_v50 = vld [vmem:[%s827_s4 + $0x60] sm:$0xff] }
  0x12   :  { %506 = vmatprep.subr.bf16.mxu1 %v573_v3  ;;  %v54_v47 = vld [vmem:[%s825_s2 + $0x78] sm:$0xff]  ;;  %v513_v48 = vpack.c.bf16 %v138_v44, %v137_v43  ;;  %v140_v51 = vld [vmem:[%s827_s4 + $0x68] sm:$0xff]  ;;  %v37_v53 = vld [vmem:[%s824_s1] sm:$0x1] }
  0x13   :  { %v36_v49 = vadd.f32 %v35_v42, %v34_v35  ;;  %v495_v52 = vpack.c.bf16 %v54_v47, %v53_v46  ;;  %v516_v54 = vpack.c.bf16 %v140_v51, %v139_v50  ;;  %v141_v56 = vld [vmem:[%s827_s4 + $0x70] sm:$0xff]  ;;  %v142_v57 = vld [vmem:[%s827_s4 + $0x78] sm:$0xff]  ;;  %v215_v59 = vld [vmem:[%s829_s6] sm:$0xff] }
  0x14   :  { %487 = vmatpush3.bf16.msra.mxu0 %v486_v31  ;;  %v519_v58 = vpack.c.bf16 %v142_v57, %v141_v56  ;;  %v216_v60 = vld [vmem:[%s829_s6 + $0x8] sm:$0xff]  ;;  %v217_v61 = vld [vmem:[%s829_s6 + $0x10] sm:$0xff]  ;;  %v218_v63 = vld [vmem:[%s829_s6 + $0x18] sm:$0xff] }
  0x15   :  { %488 = vmatprep.subr.bf16.mxu0 %v573_v3  ;;  %508 = vmatpush3.bf16.msra.mxu1 %v507_v34  ;;  %v38_v55 = vadd.f32 %v37_v53, %v36_v49  ;;  %v522_v62 = vpack.c.bf16 %v216_v60, %v215_v59  ;;  %v525_v0 = vpack.c.bf16 %v218_v63, %v217_v61  ;;  %v219_v1 = vld [vmem:[%s829_s6 + $0x20] sm:$0xff]  ;;  %v220_v2 = vld [vmem:[%s829_s6 + $0x28] sm:$0xff]  ;;  %v221_v5 = vld [vmem:[%s829_s6 + $0x30] sm:$0xff] }
  0x16   :  { %509 = vmatprep.subr.bf16.mxu1 %v573_v3  ;;  %v528_v4 = vpack.c.bf16 %v220_v2, %v219_v1  ;;  %v223_v8 = vld [vmem:[%s829_s6 + $0x40] sm:$0xff]  ;;  %v224_v9 = vld [vmem:[%s829_s6 + $0x48] sm:$0xff]  ;;  %v225_v11 = vld [vmem:[%s829_s6 + $0x50] sm:$0xff] }
  0x17   :  { %v534_v10 = vpack.c.bf16 %v224_v9, %v223_v8  ;;  %v226_v12 = vld [vmem:[%s829_s6 + $0x58] sm:$0xff]  ;;  %v227_v14 = vld [vmem:[%s829_s6 + $0x60] sm:$0xff]  ;;  %v228_v15 = vld [vmem:[%s829_s6 + $0x68] sm:$0xff] }
  0x18   :  { %490 = vmatpush3.bf16.msra.mxu0 %v489_v38  ;;  %v537_v13 = vpack.c.bf16 %v226_v12, %v225_v11  ;;  %v540_v16 = vpack.c.bf16 %v228_v15, %v227_v14  ;;  %v55_v17 = vld [vmem:[%s826_s3] sm:$0x1]  ;;  %v229_v22 = vld [vmem:[%s829_s6 + $0x70] sm:$0xff]  ;;  %v230_v23 = vld [vmem:[%s829_s6 + $0x78] sm:$0xff] }
  0x19   :  { %491 = vmatprep.subr.bf16.mxu0 %v573_v3  ;;  %511 = vmatpush3.bf16.msra.mxu1 %v510_v41  ;;  %v543_v24 = vpack.c.bf16 %v230_v23, %v229_v22  ;;  %v231_v29 = vld [vmem:[%s830_s7] sm:$0x1] }
  0x1a   :  { %512 = vmatprep.subr.bf16.mxu1 %v573_v3 }
  0x1c   :  { %493 = vmatpush3.bf16.msra.mxu0 %v492_v45 }
  0x1d   :  { %494 = vmatprep.subr.bf16.mxu0 %v573_v3  ;;  %514 = vmatpush3.bf16.msra.mxu1 %v513_v48 }
  0x1e   :  { %515 = vmatprep.subr.bf16.mxu1 %v573_v3 }
  0x20   :  { %496 = vmatpush3.bf16.msra.mxu0 %v495_v52 }
  0x21   :  { %521 = vmatprep.subr.bf16.mxu0 %v573_v3  ;;  %517 = vmatpush3.bf16.msra.mxu1 %v516_v54 }
  0x22   :  { %518 = vmatprep.subr.bf16.mxu1 %v573_v3 }
  0x23   :  { %401 = vmatmul.mubr.f32.vlgmr.msra.gmra.mrb[0].mxu0 %v38_v55 }
  0x24   :  { %470 = vmatprep.mubr.msk.f32.mxu0 %vm574_vm0, %v575_v6  ;;  %523 = vmatpush3.bf16.msra.mxu0 %v522_v62  ;;  %v222_v6 = vld [vmem:[%s829_s6 + $0x38] sm:$0xff]  ;;  %s549_s6 = scalar_lea.vmem %s310_s13, 16 }
  0x25   :  { %520 = vmatpush3.bf16.msra.mxu1 %v519_v58  ;;  %524 = vmatprep.subr.bf16.mxu0 %v573_v3  ;;  %v531_v7 = vpack.c.bf16 %v222_v6, %v221_v5  ;;  %p550_p0 = scmp.ne.s32.totalorder %s310_s13, %s549_s6  ;;  %p555_p2 = scmp.lt.s32.totalorder %s553_s14, %s549_s6 }
  0x27   :  { %p556_p3 = por %p555_p2, %p554_p1 }
  0x28   :  { %526 = vmatpush3.bf16.msra.mxu0 %v525_v0 }
  0x29   :  { %527 = vmatprep.subr.bf16.mxu0 %v573_v3  ;;  %p557_p4 = pnand %p556_p3, %p550_p0 }
  0x2c   :  { %529 = vmatpush3.bf16.msra.mxu0 %v528_v4 }
  0x2d   :  { %530 = vmatprep.subr.bf16.mxu0 %v573_v3 }
  0x30   :  { %532 = vmatpush3.bf16.msra.mxu0 %v531_v7 }
  0x31   :  { %533 = vmatprep.subr.bf16.mxu0 %v573_v3 }
  0x34   :  { %535 = vmatpush3.bf16.msra.mxu0 %v534_v10 }
  0x35   :  { %536 = vmatprep.subr.bf16.mxu0 %v573_v3 }
  0x38   :  { %538 = vmatpush3.bf16.msra.mxu0 %v537_v13 }
  0x39   :  { %539 = vmatprep.subr.bf16.mxu0 %v573_v3 }
  0x3c   :  { %541 = vmatpush3.bf16.msra.mxu0 %v540_v16 }
  0x3d   :  { %542 = vmatprep.subr.bf16.mxu0 %v573_v3  ;;  %v143_v3 = vld [vmem:[%s828_s5] sm:$0x1] }
  0x40   :  { %544 = vmatpush3.bf16.msra.mxu0 %v543_v24 }
  0xf6   :  { %v122_v18 = vpop.f32.mrb[0].mxu0 }
  0xf7   :  { %v123_v19 = vadd.f32 %v122_v18, %v55_v17  ;;  %v402_v20 = vpop.f32.mrb[1].mxu0 }
  0xf9   :  { %v126_v21 = vmax.f32 %v123_v19, 0.0 }
  0xfb   :  { %436 = vmatmul.mubr.f32.vlgmr.msra.gmra.mrb[0].mxu1 %v126_v21 }
 0x1ce   :  { %v210_v25 = vpop.f32.mrb[0].mxu1 }
 0x1cf   :  { %v211_v26 = vadd.f32 %v210_v25, %v143_v3  ;;  %v437_v27 = vpop.f32.mrb[1].mxu1 }
 0x1d1   :  { %v214_v28 = vmax.f32 %v211_v26, 0.0 }
 0x1d3   :  { %471 = vmatmul.mubr.f32.vlgmr.msra.gmra.mrb[2].mxu0 %v214_v28 }
 0x2a6   :  { %v298_v30 = vpop.f32.mrb[2].mxu0 }
 0x2a7   :  { %v299_v31 = vadd.f32 %v298_v30, %v231_v29  ;;  %v472_v32 = vpop.f32.mrb[3].mxu0 }
 0x2a9   :  { %302 = vst [vmem:[#allocation2] sm:$0x1] %v299_v31 }
 0x2aa   :  { %560 = shalt.err (!%p557_p4)
}
 0x2ab   :  { %s561_s16 = scalar_lea.hbm %s831_s8, 16 }
 0x2ac   :  { %p562_p5 = scmp.ne.s32.totalorder %s831_s8, %s561_s16  ;;  %p565_p6 = scmp.lt.u32.totalorder %s561_s16, %s831_s8 }
 0x2ae   :  { %p567_p7 = pnand %p565_p6, %p562_p5 }
 0x2b0   :  { %570 = shalt.err (!%p567_p7)
}
 0x2b1   :  { %312 = dma.vmem_to_hbm [thread:$0]  %s310_s13, 16, %s831_s8, [#allocation3]  }
 0x2b2   :  { %571 = dma.done.wait [#allocation3], 16  }
 0x2b3   :  { %572 = vsyncadd [#allocation3], 4294967280 }
 0x2b4   :  { %316 = vsyncpa [#allocation3], 1 }

// kernel: gnn_value.2
= control target key start
LH: loop header
LB: loop body
LE: loop exit
PB: predicated region body
PF: predicated region fallthrough
CT: control target
= control target key end

     0   :  { %v2807_v0 = vmov 0   ;;  %s3346_s1 = inlined_call_operand.vmem [shape: bf16[512,128], index: 1, kind: input, shape index: {}]   ;;  %s3347_s0 = inlined_call_operand.vmem [shape: bf16[512,512], index: 0, kind: input, shape index: {}]   ;;  %s3348_s2 = inlined_call_operand.vmem [shape: f32[1,128], index: 2, kind: input, shape index: {}]   ;;  %s3349_s3 = inlined_call_operand.vmem [shape: f32[8,128], index: 3, kind: output, shape index: {}]  }
   0x1   :  { %1176 = vmatprep.subr.bf16.mxu0 %v2807_v0  ;;  %1465 = vmatprep.subr.bf16.mxu1 %v2807_v0  ;;  %v2583_v1 = vld [vmem:[%s3346_s1] sm:$0xff]   ;;  %v2585_v3 = vld [vmem:[%s3346_s1 + $0x8] sm:$0xff]   ;;  %v2587_v5 = vld [vmem:[%s3346_s1 + $0x10] sm:$0xff]  }
   0x2   :  { %v2584_v2 = vld [vmem:[%s3346_s1 + $0x80] sm:$0xff]   ;;  %1177 = vmatpush1.bf16.msra.mxu0 %v2583_v1  ;;  %v2586_v4 = vld [vmem:[%s3346_s1 + $0x88] sm:$0xff]   ;;  %v2588_v6 = vld [vmem:[%s3346_s1 + $0x90] sm:$0xff]  }
   0x3   :  { %1466 = vmatpush1.bf16.msra.mxu1 %v2584_v2  ;;  %1178 = vmatprep.subr.bf16.mxu0 %v2807_v0  ;;  %v2589_v7 = vld [vmem:[%s3346_s1 + $0x18] sm:$0xff]   ;;  %v2591_v9 = vld [vmem:[%s3346_s1 + $0x20] sm:$0xff]   ;;  %v2593_v11 = vld [vmem:[%s3346_s1 + $0x28] sm:$0xff]  }
   0x4   :  { %1467 = vmatprep.subr.bf16.mxu1 %v2807_v0  ;;  %v2590_v8 = vld [vmem:[%s3346_s1 + $0x98] sm:$0xff]   ;;  %v2592_v10 = vld [vmem:[%s3346_s1 + $0xa0] sm:$0xff]   ;;  %v2594_v12 = vld [vmem:[%s3346_s1 + $0xa8] sm:$0xff]  }
   0x5   :  { %v2595_v13 = vld [vmem:[%s3346_s1 + $0x30] sm:$0xff]   ;;  %v2597_v15 = vld [vmem:[%s3346_s1 + $0x38] sm:$0xff]   ;;  %v2599_v17 = vld [vmem:[%s3346_s1 + $0x40] sm:$0xff]  }
   0x6   :  { %1179 = vmatpush1.bf16.msra.mxu0 %v2585_v3  ;;  %v2596_v14 = vld [vmem:[%s3346_s1 + $0xb0] sm:$0xff]   ;;  %v2598_v16 = vld [vmem:[%s3346_s1 + $0xb8] sm:$0xff]   ;;  %v2600_v18 = vld [vmem:[%s3346_s1 + $0xc0] sm:$0xff]  }
   0x7   :  { %1468 = vmatpush1.bf16.msra.mxu1 %v2586_v4  ;;  %1180 = vmatprep.subr.bf16.mxu0 %v2807_v0  ;;  %v2617_v19 = vld [vmem:[%s3347_s0 + $0x4] ss:$16 sps:$4 sm:$0xff]   ;;  %v2601_v20 = vld [vmem:[%s3346_s1 + $0x48] sm:$0xff]   ;;  %v2605_v25 = vld [vmem:[%s3346_s1 + $0x58] sm:$0xff]  }
   0x8   :  { %1469 = vmatprep.subr.bf16.mxu1 %v2807_v0  ;;  %v2620_v21 = vld [vmem:[%s3347_s0 + $0xc] ss:$16 sps:$4 sm:$0xff]   ;;  %1208 = vmatprep.mubr.bf16.mxu0 %v2617_v19  ;;  %v2603_v23 = vld [vmem:[%s3346_s1 + $0x50] sm:$0xff]   ;;  %v2607_v27 = vld [vmem:[%s3346_s1 + $0x60] sm:$0xff]  }
   0x9   :  { %v2602_v22 = vld [vmem:[%s3346_s1 + $0xc8] sm:$0xff]   ;;  %1497 = vmatprep.mubr.bf16.mxu1 %v2620_v21  ;;  %v2604_v24 = vld [vmem:[%s3346_s1 + $0xd0] sm:$0xff]   ;;  %v2606_v26 = vld [vmem:[%s3346_s1 + $0xd8] sm:$0xff]  }
   0xa   :  { %1181 = vmatpush1.bf16.msra.mxu0 %v2587_v5  ;;  %v2608_v28 = vld [vmem:[%s3346_s1 + $0xe0] sm:$0xff]   ;;  %v2609_v29 = vld [vmem:[%s3346_s1 + $0x68] sm:$0xff]   ;;  %v2611_v31 = vld [vmem:[%s3346_s1 + $0x70] sm:$0xff]  }
   0xb   :  { %1470 = vmatpush1.bf16.msra.mxu1 %v2588_v6  ;;  %1182 = vmatprep.subr.bf16.mxu0 %v2807_v0  ;;  %v2610_v30 = vld [vmem:[%s3346_s1 + $0xe8] sm:$0xff]   ;;  %v2612_v32 = vld [vmem:[%s3346_s1 + $0xf0] sm:$0xff]   ;;  %v2613_v33 = vld [vmem:[%s3346_s1 + $0x78] sm:$0xff]  }
   0xc   :  { %1471 = vmatprep.subr.bf16.mxu1 %v2807_v0  ;;  %v2614_v34 = vld [vmem:[%s3346_s1 + $0xf8] sm:$0xff]   ;;  %v2615_v35 = vld [vmem:[%s3347_s0] ss:$16 sps:$4 sm:$0xff]   ;;  %v2621_v37 = vld [vmem:[%s3347_s0 + $0x24] ss:$16 sps:$4 sm:$0xff]  }
   0xd   :  { %v2618_v36 = vld [vmem:[%s3347_s0 + $0x8] ss:$16 sps:$4 sm:$0xff]   ;;  %v2623_v38 = vld [vmem:[%s3347_s0 + $0x2c] ss:$16 sps:$4 sm:$0xff]   ;;  %v2625_v39 = vld [vmem:[%s3347_s0 + $0x20] ss:$16 sps:$4 sm:$0xff]  }
   0xe   :  { %1183 = vmatpush1.bf16.msra.mxu0 %v2589_v7  ;;  %v2626_v40 = vld [vmem:[%s3347_s0 + $0x28] ss:$16 sps:$4 sm:$0xff]   ;;  %v2627_v41 = vld [vmem:[%s3347_s0 + $0x44] ss:$16 sps:$4 sm:$0xff]   ;;  %v2629_v42 = vld [vmem:[%s3347_s0 + $0x4c] ss:$16 sps:$4 sm:$0xff]  }
   0xf   :  { %1472 = vmatpush1.bf16.msra.mxu1 %v2590_v8  ;;  %1184 = vmatprep.subr.bf16.mxu0 %v2807_v0  ;;  %v2631_v43 = vld [vmem:[%s3347_s0 + $0x40] ss:$16 sps:$4 sm:$0xff]   ;;  %v2632_v44 = vld [vmem:[%s3347_s0 + $0x48] ss:$16 sps:$4 sm:$0xff]   ;;  %v2633_v45 = vld [vmem:[%s3347_s0 + $0x64] ss:$16 sps:$4 sm:$0xff]  }
  0x10   :  { %1473 = vmatprep.subr.bf16.mxu1 %v2807_v0  ;;  %v2635_v46 = vld [vmem:[%s3347_s0 + $0x6c] ss:$16 sps:$4 sm:$0xff]   ;;  %v2637_v47 = vld [vmem:[%s3347_s0 + $0x60] ss:$16 sps:$4 sm:$0xff]   ;;  %v2638_v48 = vld [vmem:[%s3347_s0 + $0x68] ss:$16 sps:$4 sm:$0xff]  }
  0x11   :  { %v2639_v49 = vld [vmem:[%s3347_s0 + $0x84] ss:$16 sps:$4 sm:$0xff]   ;;  %v2641_v50 = vld [vmem:[%s3347_s0 + $0x8c] ss:$16 sps:$4 sm:$0xff]   ;;  %v2643_v51 = vld [vmem:[%s3347_s0 + $0x80] ss:$16 sps:$4 sm:$0xff]  }
  0x12   :  { %1185 = vmatpush1.bf16.msra.mxu0 %v2591_v9  ;;  %v2644_v52 = vld [vmem:[%s3347_s0 + $0x88] ss:$16 sps:$4 sm:$0xff]   ;;  %v2645_v53 = vld [vmem:[%s3347_s0 + $0xa4] ss:$16 sps:$4 sm:$0xff]   ;;  %v2647_v54 = vld [vmem:[%s3347_s0 + $0xac] ss:$16 sps:$4 sm:$0xff]  }
  0x13   :  { %1474 = vmatpush1.bf16.msra.mxu1 %v2592_v10  ;;  %1186 = vmatprep.subr.bf16.mxu0 %v2807_v0  ;;  %v2649_v55 = vld [vmem:[%s3347_s0 + $0xa0] ss:$16 sps:$4 sm:$0xff]   ;;  %v2650_v56 = vld [vmem:[%s3347_s0 + $0xa8] ss:$16 sps:$4 sm:$0xff]   ;;  %v2651_v57 = vld [vmem:[%s3347_s0 + $0xc4] ss:$16 sps:$4 sm:$0xff]  }
  0x14   :  { %1475 = vmatprep.subr.bf16.mxu1 %v2807_v0  ;;  %v2653_v58 = vld [vmem:[%s3347_s0 + $0xcc] ss:$16 sps:$4 sm:$0xff]   ;;  %v2655_v59 = vld [vmem:[%s3347_s0 + $0xc0] ss:$16 sps:$4 sm:$0xff]   ;;  %v2656_v60 = vld [vmem:[%s3347_s0 + $0xc8] ss:$16 sps:$4 sm:$0xff]  }
  0x15   :  { %v2657_v61 = vld [vmem:[%s3347_s0 + $0xe4] ss:$16 sps:$4 sm:$0xff]   ;;  %v2659_v62 = vld [vmem:[%s3347_s0 + $0xec] ss:$16 sps:$4 sm:$0xff]   ;;  %v2661_v63 = vld [vmem:[%s3347_s0 + $0xe0] ss:$16 sps:$4 sm:$0xff]  }
  0x16   :  { %1187 = vmatpush1.bf16.msra.mxu0 %v2593_v11  ;;  %v2663_v1 = vld [vmem:[%s3347_s0 + $0x104] ss:$16 sps:$4 sm:$0xff]   ;;  %v2665_v2 = vld [vmem:[%s3347_s0 + $0x10c] ss:$16 sps:$4 sm:$0xff]   ;;  %v2667_v3 = vld [vmem:[%s3347_s0 + $0x100] ss:$16 sps:$4 sm:$0xff]  }
  0x17   :  { %1476 = vmatpush1.bf16.msra.mxu1 %v2594_v12  ;;  %1188 = vmatprep.subr.bf16.mxu0 %v2807_v0  ;;  %v2668_v4 = vld [vmem:[%s3347_s0 + $0x108] ss:$16 sps:$4 sm:$0xff]   ;;  %v2669_v5 = vld [vmem:[%s3347_s0 + $0x124] ss:$16 sps:$4 sm:$0xff]   ;;  %v2671_v6 = vld [vmem:[%s3347_s0 + $0x12c] ss:$16 sps:$4 sm:$0xff]  }
  0x18   :  { %1477 = vmatprep.subr.bf16.mxu1 %v2807_v0  ;;  %v2673_v7 = vld [vmem:[%s3347_s0 + $0x120] ss:$16 sps:$4 sm:$0xff]   ;;  %v2674_v8 = vld [vmem:[%s3347_s0 + $0x128] ss:$16 sps:$4 sm:$0xff]   ;;  %v2675_v9 = vld [vmem:[%s3347_s0 + $0x144] ss:$16 sps:$4 sm:$0xff]  }
  0x19   :  { %v2677_v10 = vld [vmem:[%s3347_s0 + $0x14c] ss:$16 sps:$4 sm:$0xff]   ;;  %v2679_v11 = vld [vmem:[%s3347_s0 + $0x140] ss:$16 sps:$4 sm:$0xff]   ;;  %v2680_v12 = vld [vmem:[%s3347_s0 + $0x148] ss:$16 sps:$4 sm:$0xff]  }
  0x1a   :  { %1189 = vmatpush1.bf16.msra.mxu0 %v2595_v13  ;;  %v2681_v13 = vld [vmem:[%s3347_s0 + $0x164] ss:$16 sps:$4 sm:$0xff]   ;;  %v2691_v19 = vld [vmem:[%s3347_s0 + $0x180] ss:$16 sps:$4 sm:$0xff]  }
  0x1b   :  { %1478 = vmatpush1.bf16.msra.mxu1 %v2596_v14  ;;  %1190 = vmatprep.subr.bf16.mxu0 %v2807_v0  ;;  %v2683_v14 = vld [vmem:[%s3347_s0 + $0x16c] ss:$16 sps:$4 sm:$0xff]   ;;  %v2693_v21 = vld [vmem:[%s3347_s0 + $0x1a4] ss:$16 sps:$4 sm:$0xff]  }
  0x1c   :  { %1479 = vmatprep.subr.bf16.mxu1 %v2807_v0 }
  0x1e   :  { %1191 = vmatpush1.bf16.msra.mxu0 %v2597_v15  ;;  %v2685_v15 = vld [vmem:[%s3347_s0 + $0x160] ss:$16 sps:$4 sm:$0xff]  }
  0x1f   :  { %1480 = vmatpush1.bf16.msra.mxu1 %v2598_v16  ;;  %1192 = vmatprep.subr.bf16.mxu0 %v2807_v0  ;;  %v2686_v16 = vld [vmem:[%s3347_s0 + $0x168] ss:$16 sps:$4 sm:$0xff]  }
  0x20   :  { %1481 = vmatprep.subr.bf16.mxu1 %v2807_v0 }
  0x22   :  { %1193 = vmatpush1.bf16.msra.mxu0 %v2599_v17  ;;  %v2687_v17 = vld [vmem:[%s3347_s0 + $0x184] ss:$16 sps:$4 sm:$0xff]  }
  0x23   :  { %1482 = vmatpush1.bf16.msra.mxu1 %v2600_v18  ;;  %1194 = vmatprep.subr.bf16.mxu0 %v2807_v0  ;;  %v2689_v18 = vld [vmem:[%s3347_s0 + $0x18c] ss:$16 sps:$4 sm:$0xff]  }
  0x24   :  { %1483 = vmatprep.subr.bf16.mxu1 %v2807_v0 }
  0x26   :  { %1195 = vmatpush1.bf16.msra.mxu0 %v2601_v20  ;;  %v2692_v20 = vld [vmem:[%s3347_s0 + $0x188] ss:$16 sps:$4 sm:$0xff]  }
  0x27   :  { %1484 = vmatpush1.bf16.msra.mxu1 %v2602_v22  ;;  %1196 = vmatprep.subr.bf16.mxu0 %v2807_v0  ;;  %v2695_v22 = vld [vmem:[%s3347_s0 + $0x1ac] ss:$16 sps:$4 sm:$0xff]  }
  0x28   :  { %1485 = vmatprep.subr.bf16.mxu1 %v2807_v0 }
  0x2a   :  { %1197 = vmatpush1.bf16.msra.mxu0 %v2603_v23  ;;  %v2697_v23 = vld [vmem:[%s3347_s0 + $0x1a0] ss:$16 sps:$4 sm:$0xff]  }
  0x2b   :  { %1486 = vmatpush1.bf16.msra.mxu1 %v2604_v24  ;;  %1198 = vmatprep.subr.bf16.mxu0 %v2807_v0  ;;  %v2698_v24 = vld [vmem:[%s3347_s0 + $0x1a8] ss:$16 sps:$4 sm:$0xff]  }
  0x2c   :  { %1487 = vmatprep.subr.bf16.mxu1 %v2807_v0 }
  0x2e   :  { %1199 = vmatpush1.bf16.msra.mxu0 %v2605_v25  ;;  %v2699_v25 = vld [vmem:[%s3347_s0 + $0x1c4] ss:$16 sps:$4 sm:$0xff]  }
  0x2f   :  { %1488 = vmatpush1.bf16.msra.mxu1 %v2606_v26  ;;  %1200 = vmatprep.subr.bf16.mxu0 %v2807_v0  ;;  %v2701_v26 = vld [vmem:[%s3347_s0 + $0x1cc] ss:$16 sps:$4 sm:$0xff]  }
  0x30   :  { %1489 = vmatprep.subr.bf16.mxu1 %v2807_v0 }
  0x32   :  { %1201 = vmatpush1.bf16.msra.mxu0 %v2607_v27  ;;  %v2703_v27 = vld [vmem:[%s3347_s0 + $0x1c0] ss:$16 sps:$4 sm:$0xff]  }
  0x33   :  { %1490 = vmatpush1.bf16.msra.mxu1 %v2608_v28  ;;  %1202 = vmatprep.subr.bf16.mxu0 %v2807_v0  ;;  %v2704_v28 = vld [vmem:[%s3347_s0 + $0x1c8] ss:$16 sps:$4 sm:$0xff]  }
  0x34   :  { %1491 = vmatprep.subr.bf16.mxu1 %v2807_v0 }
  0x36   :  { %1203 = vmatpush1.bf16.msra.mxu0 %v2609_v29  ;;  %v2705_v29 = vld [vmem:[%s3347_s0 + $0x1e4] ss:$16 sps:$4 sm:$0xff]  }
  0x37   :  { %1492 = vmatpush1.bf16.msra.mxu1 %v2610_v30  ;;  %1204 = vmatprep.subr.bf16.mxu0 %v2807_v0  ;;  %v2707_v30 = vld [vmem:[%s3347_s0 + $0x1ec] ss:$16 sps:$4 sm:$0xff]  }
  0x38   :  { %1493 = vmatprep.subr.bf16.mxu1 %v2807_v0 }
  0x3a   :  { %1205 = vmatpush1.bf16.msra.mxu0 %v2611_v31  ;;  %v2709_v31 = vld [vmem:[%s3347_s0 + $0x1e0] ss:$16 sps:$4 sm:$0xff]  }
  0x3b   :  { %1494 = vmatpush1.bf16.msra.mxu1 %v2612_v32  ;;  %1206 = vmatprep.subr.bf16.mxu0 %v2807_v0  ;;  %v2710_v32 = vld [vmem:[%s3347_s0 + $0x1e8] ss:$16 sps:$4 sm:$0xff]  }
  0x3c   :  { %1495 = vmatprep.subr.bf16.mxu1 %v2807_v0  ;;  %v2662_v0 = vld [vmem:[%s3347_s0 + $0xe8] ss:$16 sps:$4 sm:$0xff]  }
  0x3e   :  { %1207 = vmatpush1.bf16.msra.mxu0 %v2613_v33  ;;  %v2711_v33 = vld [vmem:[%s3347_s0 + $0x204] ss:$16 sps:$4 sm:$0xff]  }
  0x3f   :  { %1496 = vmatpush1.bf16.msra.mxu1 %v2614_v34  ;;  %v2713_v34 = vld [vmem:[%s3347_s0 + $0x20c] ss:$16 sps:$4 sm:$0xff]  }
  0x41   :  { %1209 = vmatmul.mubr.bf16.vlgmr.msra.gmra.mrb[0].mxu0 %v2615_v35  ;;  %v2715_v35 = vld [vmem:[%s3347_s0 + $0x200] ss:$16 sps:$4 sm:$0xff]  }
  0x42   :  { %1498 = vmatmul.mubr.bf16.vlgmr.msra.gmra.mrb[0].mxu1 %v2618_v36  ;;  %1216 = vmatprep.mubr.bf16.mxu0 %v2621_v37  ;;  %v2716_v36 = vld [vmem:[%s3347_s0 + $0x208] ss:$16 sps:$4 sm:$0xff]   ;;  %v2717_v37 = vld [vmem:[%s3347_s0 + $0x224] ss:$16 sps:$4 sm:$0xff]  }
  0x43   :  { %1505 = vmatprep.mubr.bf16.mxu1 %v2623_v38  ;;  %v2719_v38 = vld [vmem:[%s3347_s0 + $0x22c] ss:$16 sps:$4 sm:$0xff]  }
  0x49   :  { %1217 = vmatmul.mubr.bf16.gmra.mrb[4].mxu0 %v2625_v39  ;;  %v2721_v39 = vld [vmem:[%s3347_s0 + $0x220] ss:$16 sps:$4 sm:$0xff]  }
  0x4a   :  { %1506 = vmatmul.mubr.bf16.gmra.mrb[4].mxu1 %v2626_v40  ;;  %1224 = vmatprep.mubr.bf16.mxu0 %v2627_v41  ;;  %v2722_v40 = vld [vmem:[%s3347_s0 + $0x228] ss:$16 sps:$4 sm:$0xff]   ;;  %v2723_v41 = vld [vmem:[%s3347_s0 + $0x244] ss:$16 sps:$4 sm:$0xff]  }
  0x4b   :  { %1513 = vmatprep.mubr.bf16.mxu1 %v2629_v42  ;;  %v2725_v42 = vld [vmem:[%s3347_s0 + $0x24c] ss:$16 sps:$4 sm:$0xff]  }
  0x51   :  { %1225 = vmatmul.mubr.bf16.gmra.mrb[8].mxu0 %v2631_v43  ;;  %v2727_v43 = vld [vmem:[%s3347_s0 + $0x240] ss:$16 sps:$4 sm:$0xff]  }
  0x52   :  { %1514 = vmatmul.mubr.bf16.gmra.mrb[8].mxu1 %v2632_v44  ;;  %1232 = vmatprep.mubr.bf16.mxu0 %v2633_v45  ;;  %v2728_v44 = vld [vmem:[%s3347_s0 + $0x248] ss:$16 sps:$4 sm:$0xff]   ;;  %v2729_v45 = vld [vmem:[%s3347_s0 + $0x264] ss:$16 sps:$4 sm:$0xff]  }
  0x53   :  { %1521 = vmatprep.mubr.bf16.mxu1 %v2635_v46  ;;  %v2731_v46 = vld [vmem:[%s3347_s0 + $0x26c] ss:$16 sps:$4 sm:$0xff]  }
  0x59   :  { %1233 = vmatmul.mubr.bf16.gmra.mrb[12].mxu0 %v2637_v47  ;;  %v2733_v47 = vld [vmem:[%s3347_s0 + $0x260] ss:$16 sps:$4 sm:$0xff]  }
  0x5a   :  { %1522 = vmatmul.mubr.bf16.gmra.mrb[12].mxu1 %v2638_v48  ;;  %1240 = vmatprep.mubr.bf16.mxu0 %v2639_v49  ;;  %v2734_v48 = vld [vmem:[%s3347_s0 + $0x268] ss:$16 sps:$4 sm:$0xff]   ;;  %v2735_v49 = vld [vmem:[%s3347_s0 + $0x284] ss:$16 sps:$4 sm:$0xff]  }
  0x5b   :  { %1529 = vmatprep.mubr.bf16.mxu1 %v2641_v50  ;;  %v2737_v50 = vld [vmem:[%s3347_s0 + $0x28c] ss:$16 sps:$4 sm:$0xff]  }
  0x61   :  { %1241 = vmatmul.mubr.bf16.gmra.mrb[16].mxu0 %v2643_v51  ;;  %v2739_v51 = vld [vmem:[%s3347_s0 + $0x280] ss:$16 sps:$4 sm:$0xff]  }
  0x62   :  { %1530 = vmatmul.mubr.bf16.gmra.mrb[16].mxu1 %v2644_v52  ;;  %1248 = vmatprep.mubr.bf16.mxu0 %v2645_v53  ;;  %v2740_v52 = vld [vmem:[%s3347_s0 + $0x288] ss:$16 sps:$4 sm:$0xff]   ;;  %v2741_v53 = vld [vmem:[%s3347_s0 + $0x2a4] ss:$16 sps:$4 sm:$0xff]  }
  0x63   :  { %1537 = vmatprep.mubr.bf16.mxu1 %v2647_v54  ;;  %v2743_v54 = vld [vmem:[%s3347_s0 + $0x2ac] ss:$16 sps:$4 sm:$0xff]  }
  0x69   :  { %1249 = vmatmul.mubr.bf16.gmra.mrb[20].mxu0 %v2649_v55  ;;  %v2745_v55 = vld [vmem:[%s3347_s0 + $0x2a0] ss:$16 sps:$4 sm:$0xff]  }
  0x6a   :  { %1538 = vmatmul.mubr.bf16.gmra.mrb[20].mxu1 %v2650_v56  ;;  %1256 = vmatprep.mubr.bf16.mxu0 %v2651_v57  ;;  %v2746_v56 = vld [vmem:[%s3347_s0 + $0x2a8] ss:$16 sps:$4 sm:$0xff]   ;;  %v2747_v57 = vld [vmem:[%s3347_s0 + $0x2c4] ss:$16 sps:$4 sm:$0xff]  }
  0x6b   :  { %1545 = vmatprep.mubr.bf16.mxu1 %v2653_v58  ;;  %v2749_v58 = vld [vmem:[%s3347_s0 + $0x2cc] ss:$16 sps:$4 sm:$0xff]  }
  0x71   :  { %1257 = vmatmul.mubr.bf16.gmra.mrb[24].mxu0 %v2655_v59  ;;  %v2751_v59 = vld [vmem:[%s3347_s0 + $0x2c0] ss:$16 sps:$4 sm:$0xff]  }
  0x72   :  { %1546 = vmatmul.mubr.bf16.gmra.mrb[24].mxu1 %v2656_v60  ;;  %1264 = vmatprep.mubr.bf16.mxu0 %v2657_v61  ;;  %v2752_v60 = vld [vmem:[%s3347_s0 + $0x2c8] ss:$16 sps:$4 sm:$0xff]   ;;  %v2753_v61 = vld [vmem:[%s3347_s0 + $0x2e4] ss:$16 sps:$4 sm:$0xff]  }
  0x73   :  { %1553 = vmatprep.mubr.bf16.mxu1 %v2659_v62  ;;  %v2755_v62 = vld [vmem:[%s3347_s0 + $0x2ec] ss:$16 sps:$4 sm:$0xff]  }
  0x79   :  { %1265 = vmatmul.mubr.bf16.gmra.mrb[28].mxu0 %v2661_v63  ;;  %v2757_v63 = vld [vmem:[%s3347_s0 + $0x2e0] ss:$16 sps:$4 sm:$0xff]  }
  0x7a   :  { %1554 = vmatmul.mubr.bf16.gmra.mrb[28].mxu1 %v2662_v0  ;;  %1272 = vmatprep.mubr.bf16.mxu0 %v2663_v1  ;;  %v2758_v0 = vld [vmem:[%s3347_s0 + $0x2e8] ss:$16 sps:$4 sm:$0xff]   ;;  %v2759_v1 = vld [vmem:[%s3347_s0 + $0x304] ss:$16 sps:$4 sm:$0xff]  }
  0x7b   :  { %1561 = vmatprep.mubr.bf16.mxu1 %v2665_v2  ;;  %v2761_v2 = vld [vmem:[%s3347_s0 + $0x30c] ss:$16 sps:$4 sm:$0xff]  }
  0x81   :  { %1273 = vmatmul.mubr.bf16.gmra.mrb[32].mxu0 %v2667_v3  ;;  %v2763_v3 = vld [vmem:[%s3347_s0 + $0x300] ss:$16 sps:$4 sm:$0xff]  }
  0x82   :  { %1562 = vmatmul.mubr.bf16.gmra.mrb[32].mxu1 %v2668_v4  ;;  %1280 = vmatprep.mubr.bf16.mxu0 %v2669_v5  ;;  %v2764_v4 = vld [vmem:[%s3347_s0 + $0x308] ss:$16 sps:$4 sm:$0xff]   ;;  %v2765_v5 = vld [vmem:[%s3347_s0 + $0x324] ss:$16 sps:$4 sm:$0xff]  }
  0x83   :  { %1569 = vmatprep.mubr.bf16.mxu1 %v2671_v6  ;;  %v2767_v6 = vld [vmem:[%s3347_s0 + $0x32c] ss:$16 sps:$4 sm:$0xff]  }
  0x89   :  { %1281 = vmatmul.mubr.bf16.gmra.mrb[36].mxu0 %v2673_v7  ;;  %v2769_v7 = vld [vmem:[%s3347_s0 + $0x320] ss:$16 sps:$4 sm:$0xff]  }
  0x8a   :  { %1570 = vmatmul.mubr.bf16.gmra.mrb[36].mxu1 %v2674_v8  ;;  %1288 = vmatprep.mubr.bf16.mxu0 %v2675_v9  ;;  %v2770_v8 = vld [vmem:[%s3347_s0 + $0x328] ss:$16 sps:$4 sm:$0xff]   ;;  %v2771_v9 = vld [vmem:[%s3347_s0 + $0x344] ss:$16 sps:$4 sm:$0xff]  }
  0x8b   :  { %1577 = vmatprep.mubr.bf16.mxu1 %v2677_v10  ;;  %v2773_v10 = vld [vmem:[%s3347_s0 + $0x34c] ss:$16 sps:$4 sm:$0xff]  }
  0x91   :  { %1289 = vmatmul.mubr.bf16.gmra.mrb[40].mxu0 %v2679_v11  ;;  %v2775_v11 = vld [vmem:[%s3347_s0 + $0x340] ss:$16 sps:$4 sm:$0xff]  }
  0x92   :  { %1578 = vmatmul.mubr.bf16.gmra.mrb[40].mxu1 %v2680_v12  ;;  %1296 = vmatprep.mubr.bf16.mxu0 %v2681_v13  ;;  %v2776_v12 = vld [vmem:[%s3347_s0 + $0x348] ss:$16 sps:$4 sm:$0xff]   ;;  %v2777_v13 = vld [vmem:[%s3347_s0 + $0x364] ss:$16 sps:$4 sm:$0xff]  }
  0x93   :  { %1585 = vmatprep.mubr.bf16.mxu1 %v2683_v14  ;;  %v2779_v14 = vld [vmem:[%s3347_s0 + $0x36c] ss:$16 sps:$4 sm:$0xff]  }
  0x99   :  { %1297 = vmatmul.mubr.bf16.gmra.mrb[44].mxu0 %v2685_v15 }
  0x9a   :  { %1586 = vmatmul.mubr.bf16.gmra.mrb[44].mxu1 %v2686_v16  ;;  %1304 = vmatprep.mubr.bf16.mxu0 %v2687_v17  ;;  %v2581_v17 = vld [vmem:[%s3348_s2] ss:$0 sm:$0xff] }
  0x9b   :  { %1593 = vmatprep.mubr.bf16.mxu1 %v2689_v18 }
  0xa1   :  { %1305 = vmatmul.mubr.bf16.gmra.mrb[48].mxu0 %v2691_v19  ;;  %v2781_v19 = vld [vmem:[%s3347_s0 + $0x360] ss:$16 sps:$4 sm:$0xff]  }
  0xa2   :  { %1594 = vmatmul.mubr.bf16.gmra.mrb[48].mxu1 %v2692_v20  ;;  %1312 = vmatprep.mubr.bf16.mxu0 %v2693_v21 }
  0xa3   :  { %1601 = vmatprep.mubr.bf16.mxu1 %v2695_v22 }
  0xa9   :  { %1313 = vmatmul.mubr.bf16.gmra.mrb[52].mxu0 %v2697_v23  ;;  %v2782_v23 = vld [vmem:[%s3347_s0 + $0x368] ss:$16 sps:$4 sm:$0xff]  }
  0xaa   :  { %1602 = vmatmul.mubr.bf16.gmra.mrb[52].mxu1 %v2698_v24  ;;  %1320 = vmatprep.mubr.bf16.mxu0 %v2699_v25  ;;  %v2783_v24 = vld [vmem:[%s3347_s0 + $0x384] ss:$16 sps:$4 sm:$0xff]  }
  0xab   :  { %1609 = vmatprep.mubr.bf16.mxu1 %v2701_v26 }
  0xb1   :  { %1321 = vmatmul.mubr.bf16.gmra.mrb[56].mxu0 %v2703_v27  ;;  %v2785_v27 = vld [vmem:[%s3347_s0 + $0x38c] ss:$16 sps:$4 sm:$0xff]  }
  0xb2   :  { %1610 = vmatmul.mubr.bf16.gmra.mrb[56].mxu1 %v2704_v28  ;;  %1328 = vmatprep.mubr.bf16.mxu0 %v2705_v29 }
  0xb3   :  { %1617 = vmatprep.mubr.bf16.mxu1 %v2707_v30 }
  0xb9   :  { %1329 = vmatmul.mubr.bf16.gmra.mrb[60].mxu0 %v2709_v31 }
  0xba   :  { %1618 = vmatmul.mubr.bf16.gmra.mrb[60].mxu1 %v2710_v32  ;;  %1336 = vmatprep.mubr.bf16.mxu0 %v2711_v33  ;;  %v2084_v33 = vlaneseq }
  0xbb   :  { %1625 = vmatprep.mubr.bf16.mxu1 %v2713_v34 }
  0xc1   :  { %1337 = vmatmul.mubr.bf16.gmra.mrb[64].mxu0 %v2715_v35 }
  0xc2   :  { %1626 = vmatmul.mubr.bf16.gmra.mrb[64].mxu1 %v2716_v36  ;;  %1344 = vmatprep.mubr.bf16.mxu0 %v2717_v37  ;;  %v2787_v36 = vld [vmem:[%s3347_s0 + $0x380] ss:$16 sps:$4 sm:$0xff]  }
  0xc3   :  { %1633 = vmatprep.mubr.bf16.mxu1 %v2719_v38 }
  0xc9   :  { %1345 = vmatmul.mubr.bf16.gmra.mrb[68].mxu0 %v2721_v39 }
  0xca   :  { %1634 = vmatmul.mubr.bf16.gmra.mrb[68].mxu1 %v2722_v40  ;;  %1352 = vmatprep.mubr.bf16.mxu0 %v2723_v41  ;;  %v2788_v40 = vld [vmem:[%s3347_s0 + $0x388] ss:$16 sps:$4 sm:$0xff]   ;;  %v2789_v41 = vld [vmem:[%s3347_s0 + $0x3a4] ss:$16 sps:$4 sm:$0xff]  }
  0xcb   :  { %1641 = vmatprep.mubr.bf16.mxu1 %v2725_v42 }
  0xd1   :  { %1353 = vmatmul.mubr.bf16.gmra.mrb[72].mxu0 %v2727_v43 }
  0xd2   :  { %1642 = vmatmul.mubr.bf16.gmra.mrb[72].mxu1 %v2728_v44  ;;  %1360 = vmatprep.mubr.bf16.mxu0 %v2729_v45  ;;  %v2791_v44 = vld [vmem:[%s3347_s0 + $0x3ac] ss:$16 sps:$4 sm:$0xff]  }
  0xd3   :  { %1649 = vmatprep.mubr.bf16.mxu1 %v2731_v46 }
  0xd9   :  { %1361 = vmatmul.mubr.bf16.gmra.mrb[76].mxu0 %v2733_v47  ;;  %v2085_v47 = vshrl.u32 %v2084_v33, 7 }
  0xda   :  { %1650 = vmatmul.mubr.bf16.gmra.mrb[76].mxu1 %v2734_v48  ;;  %1368 = vmatprep.mubr.bf16.mxu0 %v2735_v49 }
  0xdb   :  { %1657 = vmatprep.mubr.bf16.mxu1 %v2737_v50  ;;  %vm2412_vm0 = vcmp.eq.s32.totalorder %v2085_v47, 0 }
  0xe1   :  { %1369 = vmatmul.mubr.bf16.gmra.mrb[80].mxu0 %v2739_v51 }
  0xe2   :  { %1658 = vmatmul.mubr.bf16.gmra.mrb[80].mxu1 %v2740_v52  ;;  %1376 = vmatprep.mubr.bf16.mxu0 %v2741_v53  ;;  %v2793_v53 = vld [vmem:[%s3347_s0 + $0x3a0] ss:$16 sps:$4 sm:$0xff]  }
  0xe3   :  { %1665 = vmatprep.mubr.bf16.mxu1 %v2743_v54 }
  0xe9   :  { %1377 = vmatmul.mubr.bf16.gmra.mrb[84].mxu0 %v2745_v55 }
  0xea   :  { %1666 = vmatmul.mubr.bf16.gmra.mrb[84].mxu1 %v2746_v56  ;;  %1384 = vmatprep.mubr.bf16.mxu0 %v2747_v57  ;;  %v2794_v57 = vld [vmem:[%s3347_s0 + $0x3a8] ss:$16 sps:$4 sm:$0xff]  }
  0xeb   :  { %1673 = vmatprep.mubr.bf16.mxu1 %v2749_v58  ;;  %v2795_v58 = vld [vmem:[%s3347_s0 + $0x3c4] ss:$16 sps:$4 sm:$0xff]  }
  0xf1   :  { %1385 = vmatmul.mubr.bf16.gmra.mrb[88].mxu0 %v2751_v59 }
  0xf2   :  { %1674 = vmatmul.mubr.bf16.gmra.mrb[88].mxu1 %v2752_v60  ;;  %1392 = vmatprep.mubr.bf16.mxu0 %v2753_v61  ;;  %v2797_v61 = vld [vmem:[%s3347_s0 + $0x3cc] ss:$16 sps:$4 sm:$0xff]  }
  0xf3   :  { %1681 = vmatprep.mubr.bf16.mxu1 %v2755_v62 }
  0xf9   :  { %1393 = vmatmul.mubr.bf16.gmra.mrb[92].mxu0 %v2757_v63 }
  0xfa   :  { %1682 = vmatmul.mubr.bf16.gmra.mrb[92].mxu1 %v2758_v0  ;;  %1400 = vmatprep.mubr.bf16.mxu0 %v2759_v1 }
  0xfb   :  { %1689 = vmatprep.mubr.bf16.mxu1 %v2761_v2 }
 0x101   :  { %1401 = vmatmul.mubr.bf16.gmra.mrb[96].mxu0 %v2763_v3  ;;  %v2799_v3 = vld [vmem:[%s3347_s0 + $0x3c0] ss:$16 sps:$4 sm:$0xff]  }
 0x102   :  { %1690 = vmatmul.mubr.bf16.gmra.mrb[96].mxu1 %v2764_v4  ;;  %1408 = vmatprep.mubr.bf16.mxu0 %v2765_v5 }
 0x103   :  { %1697 = vmatprep.mubr.bf16.mxu1 %v2767_v6  ;;  %v2800_v6 = vld [vmem:[%s3347_s0 + $0x3c8] ss:$16 sps:$4 sm:$0xff]  }
 0x109   :  { %1409 = vmatmul.mubr.bf16.gmra.mrb[100].mxu0 %v2769_v7  ;;  %v2801_v7 = vld [vmem:[%s3347_s0 + $0x3e4] ss:$16 sps:$4 sm:$0xff]  }
 0x10a   :  { %1698 = vmatmul.mubr.bf16.gmra.mrb[100].mxu1 %v2770_v8  ;;  %1416 = vmatprep.mubr.bf16.mxu0 %v2771_v9 }
 0x10b   :  { %1705 = vmatprep.mubr.bf16.mxu1 %v2773_v10  ;;  %v2803_v10 = vld [vmem:[%s3347_s0 + $0x3ec] ss:$16 sps:$4 sm:$0xff]  }
 0x111   :  { %1417 = vmatmul.mubr.bf16.gmra.mrb[104].mxu0 %v2775_v11 }
 0x112   :  { %1706 = vmatmul.mubr.bf16.gmra.mrb[104].mxu1 %v2776_v12  ;;  %1424 = vmatprep.mubr.bf16.mxu0 %v2777_v13 }
 0x113   :  { %1713 = vmatprep.mubr.bf16.mxu1 %v2779_v14 }
 0x114   :  { %v1210_v15 = vpop.f32.mrb[0].mxu0 }
 0x115   :  { %v1499_v16 = vpop.f32.mrb[0].mxu1  ;;  %v1212_v18 = vpop.f32.mrb[1].mxu0 }
 0x116   :  { %v1500_v20 = vadd.f32 %v1499_v16, %v1210_v15  ;;  %v1501_v21 = vpop.f32.mrb[1].mxu1  ;;  %v1213_v22 = vpop.f32.mrb[2].mxu0  ;;  %v2805_v15 = vld [vmem:[%s3347_s0 + $0x3e0] ss:$16 sps:$4 sm:$0xff]   ;;  %v2806_v18 = vld [vmem:[%s3347_s0 + $0x3e8] ss:$16 sps:$4 sm:$0xff]  }
 0x117   :  { %v1502_v25 = vpop.f32.mrb[2].mxu1  ;;  %v1215_v26 = vpop.f32.mrb[3].mxu0 }
 0x118   :  { %v1956_v28 = vadd.f32 %v2581_v17, %v1500_v20  ;;  %v1504_v29 = vpop.f32.mrb[3].mxu1 }
 0x119   :  { %1425 = vmatmul.mubr.bf16.gmra.mrb[108].mxu0 %v2781_v19 }
 0x11a   :  { %v2020_v30 = vmax.f32 %v1956_v28, 0.0  ;;  %1714 = vmatmul.mubr.bf16.gmra.mrb[108].mxu1 %v2782_v23  ;;  %1432 = vmatprep.mubr.bf16.mxu0 %v2783_v24 }
 0x11b   :  { %1721 = vmatprep.mubr.bf16.mxu1 %v2785_v27 }
 0x11c   :  { %v2406_v31 = vrot.slane %v2020_v30, 4  ;;  %v1218_v32 = vpop.f32.mrb[4].mxu0 }
 0x11d   :  { %v1507_v34 = vpop.f32.mrb[4].mxu1  ;;  %v1220_v35 = vpop.f32.mrb[5].mxu0 }
 0x11e   :  { %v2407_v37 = vadd.f32 %v2406_v31, %v2020_v30  ;;  %v1509_v38 = vpop.f32.mrb[5].mxu1  ;;  %v1221_v39 = vpop.f32.mrb[6].mxu0 }
 0x11f   :  { %v1510_v42 = vpop.f32.mrb[6].mxu1  ;;  %v1223_v43 = vpop.f32.mrb[7].mxu0 }
 0x120   :  { %v2408_v45 = vrot.slane %v2407_v37, 2  ;;  %v1512_v46 = vpop.f32.mrb[7].mxu1 }
 0x121   :  { %1433 = vmatmul.mubr.bf16.gmra.mrb[112].mxu0 %v2787_v36 }
 0x122   :  { %v2409_v48 = vadd.f32 %v2408_v45, %v2407_v37  ;;  %1722 = vmatmul.mubr.bf16.gmra.mrb[112].mxu1 %v2788_v40  ;;  %1440 = vmatprep.mubr.bf16.mxu0 %v2789_v41 }
 0x123   :  { %1729 = vmatprep.mubr.bf16.mxu1 %v2791_v44 }
 0x124   :  { %v2410_v49 = vrot.slane %v2409_v48, 1  ;;  %v1226_v50 = vpop.f32.mrb[8].mxu0 }
 0x125   :  { %v1515_v51 = vpop.f32.mrb[8].mxu1  ;;  %v1228_v52 = vpop.f32.mrb[9].mxu0 }
 0x126   :  { %v2411_v54 = vadd.f32 %v2410_v49, %v2409_v48  ;;  %v1517_v55 = vpop.f32.mrb[9].mxu1  ;;  %v1229_v56 = vpop.f32.mrb[10].mxu0 }
 0x127   :  { %v1518_v59 = vpop.f32.mrb[10].mxu1  ;;  %v1231_v60 = vpop.f32.mrb[11].mxu0 }
 0x128   :  { %v2413_v62 = vsel %vm2412_vm0, %v2411_v54, 0.0  ;;  %v1520_v63 = vpop.f32.mrb[11].mxu1 }
 0x129   :  { %2414 = vst [vmem:[%s3349_s3] sm:$0xff] %v2413_v62  ;;  %1441 = vmatmul.mubr.bf16.gmra.mrb[116].mxu0 %v2793_v53 }
 0x12a   :  { %1730 = vmatmul.mubr.bf16.gmra.mrb[116].mxu1 %v2794_v57  ;;  %1448 = vmatprep.mubr.bf16.mxu0 %v2795_v58 }
 0x12b   :  { %1737 = vmatprep.mubr.bf16.mxu1 %v2797_v61 }
 0x12c   :  { %v1234_v0 = vpop.f32.mrb[12].mxu0 }
 0x12d   :  { %v1523_v1 = vpop.f32.mrb[12].mxu1  ;;  %v1236_v2 = vpop.f32.mrb[13].mxu0 }
 0x12e   :  { %v1525_v4 = vpop.f32.mrb[13].mxu1  ;;  %v1237_v5 = vpop.f32.mrb[14].mxu0 }
 0x12f   :  { %v1526_v8 = vpop.f32.mrb[14].mxu1  ;;  %v1239_v9 = vpop.f32.mrb[15].mxu0 }
 0x130   :  { %v1528_v11 = vpop.f32.mrb[15].mxu1 }
 0x131   :  { %1449 = vmatmul.mubr.bf16.gmra.mrb[120].mxu0 %v2799_v3 }
 0x132   :  { %1738 = vmatmul.mubr.bf16.gmra.mrb[120].mxu1 %v2800_v6  ;;  %1456 = vmatprep.mubr.bf16.mxu0 %v2801_v7 }
 0x133   :  { %1745 = vmatprep.mubr.bf16.mxu1 %v2803_v10 }
 0x134   :  { %v1242_v12 = vpop.f32.mrb[16].mxu0 }
 0x135   :  { %v1531_v13 = vpop.f32.mrb[16].mxu1  ;;  %v1244_v14 = vpop.f32.mrb[17].mxu0 }
 0x136   :  { %v1533_v16 = vpop.f32.mrb[17].mxu1  ;;  %v1245_v17 = vpop.f32.mrb[18].mxu0 }
 0x137   :  { %v1534_v19 = vpop.f32.mrb[18].mxu1  ;;  %v1247_v20 = vpop.f32.mrb[19].mxu0 }
 0x138   :  { %v1536_v21 = vpop.f32.mrb[19].mxu1 }
 0x139   :  { %1457 = vmatmul.mubr.bf16.gmra.mrb[124].mxu0 %v2805_v15 }
 0x13a   :  { %1746 = vmatmul.mubr.bf16.gmra.mrb[124].mxu1 %v2806_v18 }
 0x13c   :  { %v1250_v22 = vpop.f32.mrb[20].mxu0 }
 0x13d   :  { %v1539_v23 = vpop.f32.mrb[20].mxu1  ;;  %v1252_v24 = vpop.f32.mrb[21].mxu0 }
 0x13e   :  { %v1541_v25 = vpop.f32.mrb[21].mxu1  ;;  %v1253_v26 = vpop.f32.mrb[22].mxu0 }
 0x13f   :  { %v1542_v27 = vpop.f32.mrb[22].mxu1  ;;  %v1255_v28 = vpop.f32.mrb[23].mxu0 }
 0x140   :  { %v1544_v29 = vpop.f32.mrb[23].mxu1 }
 0x144   :  { %v1258_v30 = vpop.f32.mrb[24].mxu0 }
 0x145   :  { %v1547_v31 = vpop.f32.mrb[24].mxu1  ;;  %v1260_v32 = vpop.f32.mrb[25].mxu0 }
 0x146   :  { %v1549_v33 = vpop.f32.mrb[25].mxu1  ;;  %v1261_v34 = vpop.f32.mrb[26].mxu0 }
 0x147   :  { %v1550_v35 = vpop.f32.mrb[26].mxu1  ;;  %v1263_v36 = vpop.f32.mrb[27].mxu0 }
 0x148   :  { %v1552_v37 = vpop.f32.mrb[27].mxu1 }
 0x14c   :  { %v1266_v38 = vpop.f32.mrb[28].mxu0 }
 0x14d   :  { %v1555_v39 = vpop.f32.mrb[28].mxu1  ;;  %v1268_v40 = vpop.f32.mrb[29].mxu0 }
 0x14e   :  { %v1557_v41 = vpop.f32.mrb[29].mxu1  ;;  %v1269_v42 = vpop.f32.mrb[30].mxu0 }
 0x14f   :  { %v1558_v43 = vpop.f32.mrb[30].mxu1  ;;  %v1271_v44 = vpop.f32.mrb[31].mxu0 }
 0x150   :  { %v1560_v45 = vpop.f32.mrb[31].mxu1 }
 0x154   :  { %v1274_v46 = vpop.f32.mrb[32].mxu0 }
 0x155   :  { %v1563_v47 = vpop.f32.mrb[32].mxu1  ;;  %v1276_v48 = vpop.f32.mrb[33].mxu0 }
 0x156   :  { %v1565_v49 = vpop.f32.mrb[33].mxu1  ;;  %v1277_v50 = vpop.f32.mrb[34].mxu0 }
 0x157   :  { %v1566_v51 = vpop.f32.mrb[34].mxu1  ;;  %v1279_v52 = vpop.f32.mrb[35].mxu0 }
 0x158   :  { %v1568_v53 = vpop.f32.mrb[35].mxu1 }
 0x15c   :  { %v1282_v54 = vpop.f32.mrb[36].mxu0 }
 0x15d   :  { %v1571_v55 = vpop.f32.mrb[36].mxu1  ;;  %v1284_v56 = vpop.f32.mrb[37].mxu0 }
 0x15e   :  { %v1573_v57 = vpop.f32.mrb[37].mxu1  ;;  %v1285_v58 = vpop.f32.mrb[38].mxu0 }
 0x15f   :  { %v1574_v59 = vpop.f32.mrb[38].mxu1  ;;  %v1287_v60 = vpop.f32.mrb[39].mxu0 }
 0x160   :  { %v1576_v61 = vpop.f32.mrb[39].mxu1 }
 0x164   :  { %v1290_v62 = vpop.f32.mrb[40].mxu0 }
 0x165   :  { %v1579_v63 = vpop.f32.mrb[40].mxu1  ;;  %v1292_v0 = vpop.f32.mrb[41].mxu0 }
 0x166   :  { %v1581_v1 = vpop.f32.mrb[41].mxu1  ;;  %v1293_v2 = vpop.f32.mrb[42].mxu0 }
 0x167   :  { %v1582_v3 = vpop.f32.mrb[42].mxu1  ;;  %v1295_v4 = vpop.f32.mrb[43].mxu0 }
 0x168   :  { %v1584_v5 = vpop.f32.mrb[43].mxu1 }
 0x16c   :  { %v1298_v6 = vpop.f32.mrb[44].mxu0 }
 0x16d   :  { %v1587_v7 = vpop.f32.mrb[44].mxu1  ;;  %v1300_v8 = vpop.f32.mrb[45].mxu0 }
 0x16e   :  { %v1589_v9 = vpop.f32.mrb[45].mxu1  ;;  %v1301_v10 = vpop.f32.mrb[46].mxu0 }
 0x16f   :  { %v1590_v11 = vpop.f32.mrb[46].mxu1  ;;  %v1303_v12 = vpop.f32.mrb[47].mxu0 }
 0x170   :  { %v1592_v13 = vpop.f32.mrb[47].mxu1 }
 0x174   :  { %v1306_v14 = vpop.f32.mrb[48].mxu0 }
 0x175   :  { %v1595_v15 = vpop.f32.mrb[48].mxu1  ;;  %v1308_v16 = vpop.f32.mrb[49].mxu0 }
 0x176   :  { %v1597_v17 = vpop.f32.mrb[49].mxu1  ;;  %v1309_v18 = vpop.f32.mrb[50].mxu0 }
 0x177   :  { %v1598_v19 = vpop.f32.mrb[50].mxu1  ;;  %v1311_v20 = vpop.f32.mrb[51].mxu0 }
 0x178   :  { %v1600_v21 = vpop.f32.mrb[51].mxu1 }
 0x17c   :  { %v1314_v22 = vpop.f32.mrb[52].mxu0 }
 0x17d   :  { %v1603_v23 = vpop.f32.mrb[52].mxu1  ;;  %v1316_v24 = vpop.f32.mrb[53].mxu0 }
 0x17e   :  { %v1605_v25 = vpop.f32.mrb[53].mxu1  ;;  %v1317_v26 = vpop.f32.mrb[54].mxu0 }
 0x17f   :  { %v1606_v27 = vpop.f32.mrb[54].mxu1  ;;  %v1319_v28 = vpop.f32.mrb[55].mxu0 }
 0x180   :  { %v1608_v29 = vpop.f32.mrb[55].mxu1 }
 0x184   :  { %v1322_v30 = vpop.f32.mrb[56].mxu0 }
 0x185   :  { %v1611_v31 = vpop.f32.mrb[56].mxu1  ;;  %v1324_v32 = vpop.f32.mrb[57].mxu0 }
 0x186   :  { %v1613_v33 = vpop.f32.mrb[57].mxu1  ;;  %v1325_v34 = vpop.f32.mrb[58].mxu0 }
 0x187   :  { %v1614_v35 = vpop.f32.mrb[58].mxu1  ;;  %v1327_v36 = vpop.f32.mrb[59].mxu0 }
 0x188   :  { %v1616_v37 = vpop.f32.mrb[59].mxu1 }
 0x18c   :  { %v1330_v38 = vpop.f32.mrb[60].mxu0 }
 0x18d   :  { %v1619_v39 = vpop.f32.mrb[60].mxu1  ;;  %v1332_v40 = vpop.f32.mrb[61].mxu0 }
 0x18e   :  { %v1621_v41 = vpop.f32.mrb[61].mxu1  ;;  %v1333_v42 = vpop.f32.mrb[62].mxu0 }
 0x18f   :  { %v1622_v43 = vpop.f32.mrb[62].mxu1  ;;  %v1335_v44 = vpop.f32.mrb[63].mxu0 }
 0x190   :  { %v1624_v45 = vpop.f32.mrb[63].mxu1 }
 0x194   :  { %v1338_v46 = vpop.f32.mrb[64].mxu0 }
 0x195   :  { %v1627_v47 = vpop.f32.mrb[64].mxu1  ;;  %v1340_v48 = vpop.f32.mrb[65].mxu0 }
 0x196   :  { %v1629_v49 = vpop.f32.mrb[65].mxu1  ;;  %v1341_v50 = vpop.f32.mrb[66].mxu0 }
 0x197   :  { %v1630_v51 = vpop.f32.mrb[66].mxu1  ;;  %v1343_v52 = vpop.f32.mrb[67].mxu0 }
 0x198   :  { %v1632_v53 = vpop.f32.mrb[67].mxu1 }
 0x19c   :  { %v1346_v54 = vpop.f32.mrb[68].mxu0 }
 0x19d   :  { %v1635_v55 = vpop.f32.mrb[68].mxu1  ;;  %v1348_v56 = vpop.f32.mrb[69].mxu0 }
 0x19e   :  { %v1637_v57 = vpop.f32.mrb[69].mxu1  ;;  %v1349_v58 = vpop.f32.mrb[70].mxu0 }
 0x19f   :  { %v1638_v59 = vpop.f32.mrb[70].mxu1  ;;  %v1351_v60 = vpop.f32.mrb[71].mxu0 }
 0x1a0   :  { %v1640_v61 = vpop.f32.mrb[71].mxu1 }
 0x1a4   :  { %v1354_v62 = vpop.f32.mrb[72].mxu0 }
 0x1a5   :  { %v1643_v63 = vpop.f32.mrb[72].mxu1  ;;  %v1356_v0 = vpop.f32.mrb[73].mxu0 }
 0x1a6   :  { %v1645_v1 = vpop.f32.mrb[73].mxu1  ;;  %v1357_v2 = vpop.f32.mrb[74].mxu0 }
 0x1a7   :  { %v1646_v3 = vpop.f32.mrb[74].mxu1  ;;  %v1359_v4 = vpop.f32.mrb[75].mxu0 }
 0x1a8   :  { %v1648_v5 = vpop.f32.mrb[75].mxu1 }
 0x1ac   :  { %v1362_v6 = vpop.f32.mrb[76].mxu0 }
 0x1ad   :  { %v1651_v7 = vpop.f32.mrb[76].mxu1  ;;  %v1364_v8 = vpop.f32.mrb[77].mxu0 }
 0x1ae   :  { %v1653_v9 = vpop.f32.mrb[77].mxu1  ;;  %v1365_v10 = vpop.f32.mrb[78].mxu0 }
 0x1af   :  { %v1654_v11 = vpop.f32.mrb[78].mxu1  ;;  %v1367_v12 = vpop.f32.mrb[79].mxu0 }
 0x1b0   :  { %v1656_v13 = vpop.f32.mrb[79].mxu1 }
 0x1b4   :  { %v1370_v14 = vpop.f32.mrb[80].mxu0 }
 0x1b5   :  { %v1659_v15 = vpop.f32.mrb[80].mxu1  ;;  %v1372_v16 = vpop.f32.mrb[81].mxu0 }
 0x1b6   :  { %v1661_v17 = vpop.f32.mrb[81].mxu1  ;;  %v1373_v18 = vpop.f32.mrb[82].mxu0 }
 0x1b7   :  { %v1662_v19 = vpop.f32.mrb[82].mxu1  ;;  %v1375_v20 = vpop.f32.mrb[83].mxu0 }
 0x1b8   :  { %v1664_v21 = vpop.f32.mrb[83].mxu1 }
 0x1bc   :  { %v1378_v22 = vpop.f32.mrb[84].mxu0 }
 0x1bd   :  { %v1667_v23 = vpop.f32.mrb[84].mxu1  ;;  %v1380_v24 = vpop.f32.mrb[85].mxu0 }
 0x1be   :  { %v1669_v25 = vpop.f32.mrb[85].mxu1  ;;  %v1381_v26 = vpop.f32.mrb[86].mxu0 }
 0x1bf   :  { %v1670_v27 = vpop.f32.mrb[86].mxu1  ;;  %v1383_v28 = vpop.f32.mrb[87].mxu0 }
 0x1c0   :  { %v1672_v29 = vpop.f32.mrb[87].mxu1 }
 0x1c4   :  { %v1386_v30 = vpop.f32.mrb[88].mxu0 }
 0x1c5   :  { %v1675_v31 = vpop.f32.mrb[88].mxu1  ;;  %v1388_v32 = vpop.f32.mrb[89].mxu0 }
 0x1c6   :  { %v1677_v33 = vpop.f32.mrb[89].mxu1  ;;  %v1389_v34 = vpop.f32.mrb[90].mxu0 }
 0x1c7   :  { %v1678_v35 = vpop.f32.mrb[90].mxu1  ;;  %v1391_v36 = vpop.f32.mrb[91].mxu0 }
 0x1c8   :  { %v1680_v37 = vpop.f32.mrb[91].mxu1 }
 0x1cc   :  { %v1394_v38 = vpop.f32.mrb[92].mxu0 }
 0x1cd   :  { %v1683_v39 = vpop.f32.mrb[92].mxu1  ;;  %v1396_v40 = vpop.f32.mrb[93].mxu0 }
 0x1ce   :  { %v1685_v41 = vpop.f32.mrb[93].mxu1  ;;  %v1397_v42 = vpop.f32.mrb[94].mxu0 }
 0x1cf   :  { %v1686_v43 = vpop.f32.mrb[94].mxu1  ;;  %v1399_v44 = vpop.f32.mrb[95].mxu0 }
 0x1d0   :  { %v1688_v45 = vpop.f32.mrb[95].mxu1 }
 0x1d4   :  { %v1402_v46 = vpop.f32.mrb[96].mxu0 }
 0x1d5   :  { %v1691_v47 = vpop.f32.mrb[96].mxu1  ;;  %v1404_v48 = vpop.f32.mrb[97].mxu0 }
 0x1d6   :  { %v1693_v49 = vpop.f32.mrb[97].mxu1  ;;  %v1405_v50 = vpop.f32.mrb[98].mxu0 }
 0x1d7   :  { %v1694_v51 = vpop.f32.mrb[98].mxu1  ;;  %v1407_v52 = vpop.f32.mrb[99].mxu0 }
 0x1d8   :  { %v1696_v53 = vpop.f32.mrb[99].mxu1 }
 0x1dc   :  { %v1410_v54 = vpop.f32.mrb[100].mxu0 }
 0x1dd   :  { %v1699_v55 = vpop.f32.mrb[100].mxu1  ;;  %v1412_v56 = vpop.f32.mrb[101].mxu0 }
 0x1de   :  { %v1701_v57 = vpop.f32.mrb[101].mxu1  ;;  %v1413_v58 = vpop.f32.mrb[102].mxu0 }
 0x1df   :  { %v1702_v59 = vpop.f32.mrb[102].mxu1  ;;  %v1415_v60 = vpop.f32.mrb[103].mxu0 }
 0x1e0   :  { %v1704_v61 = vpop.f32.mrb[103].mxu1 }
 0x1e4   :  { %v1418_v62 = vpop.f32.mrb[104].mxu0 }
 0x1e5   :  { %v1707_v63 = vpop.f32.mrb[104].mxu1  ;;  %v1420_v0 = vpop.f32.mrb[105].mxu0 }
 0x1e6   :  { %v1709_v1 = vpop.f32.mrb[105].mxu1  ;;  %v1421_v2 = vpop.f32.mrb[106].mxu0 }
 0x1e7   :  { %v1710_v3 = vpop.f32.mrb[106].mxu1  ;;  %v1423_v4 = vpop.f32.mrb[107].mxu0 }
 0x1e8   :  { %v1712_v5 = vpop.f32.mrb[107].mxu1 }
 0x1ec   :  { %v1426_v6 = vpop.f32.mrb[108].mxu0 }
 0x1ed   :  { %v1715_v7 = vpop.f32.mrb[108].mxu1  ;;  %v1428_v8 = vpop.f32.mrb[109].mxu0 }
 0x1ee   :  { %v1717_v9 = vpop.f32.mrb[109].mxu1  ;;  %v1429_v10 = vpop.f32.mrb[110].mxu0 }
 0x1ef   :  { %v1718_v11 = vpop.f32.mrb[110].mxu1  ;;  %v1431_v12 = vpop.f32.mrb[111].mxu0 }
 0x1f0   :  { %v1720_v13 = vpop.f32.mrb[111].mxu1 }
 0x1f4   :  { %v1434_v14 = vpop.f32.mrb[112].mxu0 }
 0x1f5   :  { %v1723_v15 = vpop.f32.mrb[112].mxu1  ;;  %v1436_v16 = vpop.f32.mrb[113].mxu0 }
 0x1f6   :  { %v1725_v17 = vpop.f32.mrb[113].mxu1  ;;  %v1437_v18 = vpop.f32.mrb[114].mxu0 }
 0x1f7   :  { %v1726_v19 = vpop.f32.mrb[114].mxu1  ;;  %v1439_v20 = vpop.f32.mrb[115].mxu0 }
 0x1f8   :  { %v1728_v21 = vpop.f32.mrb[115].mxu1 }
 0x1fc   :  { %v1442_v22 = vpop.f32.mrb[116].mxu0 }
 0x1fd   :  { %v1731_v23 = vpop.f32.mrb[116].mxu1  ;;  %v1444_v24 = vpop.f32.mrb[117].mxu0 }
 0x1fe   :  { %v1733_v25 = vpop.f32.mrb[117].mxu1  ;;  %v1445_v26 = vpop.f32.mrb[118].mxu0 }
 0x1ff   :  { %v1734_v27 = vpop.f32.mrb[118].mxu1  ;;  %v1447_v28 = vpop.f32.mrb[119].mxu0 }
 0x200   :  { %v1736_v29 = vpop.f32.mrb[119].mxu1 }
 0x204   :  { %v1450_v30 = vpop.f32.mrb[120].mxu0 }
 0x205   :  { %v1739_v31 = vpop.f32.mrb[120].mxu1  ;;  %v1452_v32 = vpop.f32.mrb[121].mxu0 }
 0x206   :  { %v1741_v33 = vpop.f32.mrb[121].mxu1  ;;  %v1453_v34 = vpop.f32.mrb[122].mxu0 }
 0x207   :  { %v1742_v35 = vpop.f32.mrb[122].mxu1  ;;  %v1455_v36 = vpop.f32.mrb[123].mxu0 }
 0x208   :  { %v1744_v37 = vpop.f32.mrb[123].mxu1 }
 0x20c   :  { %v1458_v38 = vpop.f32.mrb[124].mxu0 }
 0x20d   :  { %v1747_v39 = vpop.f32.mrb[124].mxu1  ;;  %v1460_v40 = vpop.f32.mrb[125].mxu0 }
 0x20e   :  { %v1749_v41 = vpop.f32.mrb[125].mxu1  ;;  %v1461_v42 = vpop.f32.mrb[126].mxu0 }
 0x20f   :  { %v1750_v43 = vpop.f32.mrb[126].mxu1  ;;  %v1463_v44 = vpop.f32.mrb[127].mxu0 }
 0x210   :  { %v1752_v45 = vpop.f32.mrb[127].mxu1 }

</bundles_post_ra>
